<compile_context>
chip_gen: v6e
topology: v6e:2x2x1
jax: 0.10.0
libtpu: 0.0.40
codegen_flags: <defaults>
</compile_context>

<pallas_src>
import functools

import jax
import jax.numpy as jnp
from jax import lax
from jax.experimental import pallas as pl
from jax.experimental.pallas import tpu as pltpu


def _round_up(x, m):
    return ((x + m - 1) // m) * m


_VMEM_LIMIT = 32 * 1024 * 1024        # raise v5e's 16 MiB scoped default
_TARGET_BLOCK_BYTES = 2 * 1024 * 1024  # ~2 MiB blocks: >85% of HBM roofline


# ----------------------------------------------------------------------------
# Pallas matmul kernels: bf16 x bf16, f32 VMEM accumulator, bf16 output.
# Variants: plain (+ReLU), bias (+ReLU), fused BN-stats epilogue.
# ----------------------------------------------------------------------------
def _mm_kernel(a_ref, b_ref, o_ref, acc_ref, *, relu):
    k = pl.program_id(2)

    @pl.when(k == 0)
    def _():
        acc_ref[...] = jnp.zeros_like(acc_ref)

    acc_ref[...] += jnp.dot(a_ref[...], b_ref[...],
                            preferred_element_type=jnp.float32)

    @pl.when(k == pl.num_programs(2) - 1)
    def _():
        y = acc_ref[...]
        if relu:
            y = jnp.maximum(y, 0.0)
        o_ref[...] = y.astype(o_ref.dtype)


def _mm_bias_kernel(a_ref, b_ref, bias_ref, o_ref, acc_ref, *, relu):
    k = pl.program_id(2)

    @pl.when(k == 0)
    def _():
        acc_ref[...] = jnp.zeros_like(acc_ref)

    acc_ref[...] += jnp.dot(a_ref[...], b_ref[...],
                            preferred_element_type=jnp.float32)

    @pl.when(k == pl.num_programs(2) - 1)
    def _():
        y = acc_ref[...] + bias_ref[...]
        if relu:
            y = jnp.maximum(y, 0.0)
        o_ref[...] = y.astype(o_ref.dtype)


def _mm_stats_kernel(a_ref, b_ref, o_ref, s_ref, q_ref, acc_ref):
    # Grid is (j, i, k): the output-column axis j is outermost so the (1, tn)
    # per-channel stat tiles stay VMEM-resident while all row tiles (i) and
    # reduction steps (k) accumulate into them.  Padded rows of A are zero
    # (no bias in this variant) so they contribute nothing to the stats.
    i = pl.program_id(1)
    k = pl.program_id(2)

    @pl.when(k == 0)
    def _():
        acc_ref[...] = jnp.zeros_like(acc_ref)

    @pl.when(jnp.logical_and(i == 0, k == 0))
    def _():
        s_ref[...] = jnp.zeros_like(s_ref)
        q_ref[...] = jnp.zeros_like(q_ref)

    acc_ref[...] += jnp.dot(a_ref[...], b_ref[...],
                            preferred_element_type=jnp.float32)

    @pl.when(k == pl.num_programs(2) - 1)
    def _():
        y = acc_ref[...]
        o_ref[...] = y.astype(o_ref.dtype)
        s_ref[...] += jnp.sum(y, axis=0, keepdims=True)
        q_ref[...] += jnp.sum(y * y, axis=0, keepdims=True)


def _pick_tile(dim, prefs, min_blocks=1):
    for t in prefs:
        if dim % t == 0 and dim // t >= min_blocks:
            return t
    return 128


def pallas_matmul(a, b, bias=None, relu=False, bn_stats=False):
    """a: (M, K) bf16; b: (K, Np) bf16 (K, Np multiples of 128);
    bias: (Np,) f32 or None.  Returns (M, Np) bf16; if bn_stats also returns
    per-channel (1, Np) f32 sum and sum-of-squares over the M rows."""
    M, K = a.shape
    Kb, Np = b.shape
    assert K == Kb and K % 128 == 0 and Np % 128 == 0
    if a.dtype != jnp.bfloat16:
        a = a.astype(jnp.bfloat16)

    if M <= 256:
        tm = _round_up(max(M, 1), 16)
    else:
        # Small weight matrix (head convs): grow row tile to amortize the
        # fixed per-step cost of streaming tiny B blocks.
        tm = 512 if (K <= 256 and Np <= 256) else 256
    Mp = _round_up(M, tm)
    if Mp != M:
        a = jnp.pad(a, ((0, Mp - M), (0, 0)))

    small_m = (Mp // tm) == 1
    if small_m:
        # Few row tiles: grow K/N tiles so the grid is not per-step-overhead
        # bound, but keep >=2 column blocks when possible (v7x megacore).
        tk = _pick_tile(K, (512, 256, 128))
        tn = _pick_tile(Np, (512, 256, 128), min_blocks=2)
    else:
        tk = _pick_tile(K, (256, 128))
        tn = _pick_tile(Np, (256, 128))
    ni, nj, nk = Mp // tm, Np // tn, K // tk

    cost = pl.CostEstimate(
        flops=int(2 * Mp * Np * K), transcendentals=0,
        bytes_accessed=int(Mp * K * 2 * nj + K * Np * 2 * ni + Mp * Np * 2))
    acc = pltpu.VMEM((tm, tn), jnp.float32)

    if bn_stats:
        assert bias is None and not relu
        y, s, q = pl.pallas_call(
            _mm_stats_kernel,
            out_shape=(jax.ShapeDtypeStruct((Mp, Np), jnp.bfloat16),
                       jax.ShapeDtypeStruct((1, Np), jnp.float32),
                       jax.ShapeDtypeStruct((1, Np), jnp.float32)),
            grid=(nj, ni, nk),
            in_specs=[pl.BlockSpec((tm, tk), lambda j, i, k: (i, k)),
                      pl.BlockSpec((tk, tn), lambda j, i, k: (k, j))],
            out_specs=(pl.BlockSpec((tm, tn), lambda j, i, k: (i, j)),
                       pl.BlockSpec((1, tn), lambda j, i, k: (0, j)),
                       pl.BlockSpec((1, tn), lambda j, i, k: (0, j))),
            scratch_shapes=[acc],
            compiler_params=pltpu.CompilerParams(
                dimension_semantics=("parallel", "arbitrary", "arbitrary"),
                vmem_limit_bytes=_VMEM_LIMIT),
            cost_estimate=cost,
        )(a, b)
        if Mp != M:
            y = y[:M]
        return y, s, q

    if bias is not None:
        kernel = functools.partial(_mm_bias_kernel, relu=relu)
        y = pl.pallas_call(
            kernel,
            out_shape=jax.ShapeDtypeStruct((Mp, Np), jnp.bfloat16),
            grid=(ni, nj, nk),
            in_specs=[pl.BlockSpec((tm, tk), lambda i, j, k: (i, k)),
                      pl.BlockSpec((tk, tn), lambda i, j, k: (k, j)),
                      pl.BlockSpec((1, tn), lambda i, j, k: (0, j))],
            out_specs=pl.BlockSpec((tm, tn), lambda i, j, k: (i, j)),
            scratch_shapes=[acc],
            compiler_params=pltpu.CompilerParams(
                dimension_semantics=("parallel", "parallel", "arbitrary"),
                vmem_limit_bytes=_VMEM_LIMIT),
            cost_estimate=cost,
        )(a, b, bias.reshape(1, Np))
    else:
        kernel = functools.partial(_mm_kernel, relu=relu)
        y = pl.pallas_call(
            kernel,
            out_shape=jax.ShapeDtypeStruct((Mp, Np), jnp.bfloat16),
            grid=(ni, nj, nk),
            in_specs=[pl.BlockSpec((tm, tk), lambda i, j, k: (i, k)),
                      pl.BlockSpec((tk, tn), lambda i, j, k: (k, j))],
            out_specs=pl.BlockSpec((tm, tn), lambda i, j, k: (i, j)),
            scratch_shapes=[acc],
            compiler_params=pltpu.CompilerParams(
                dimension_semantics=("parallel", "parallel", "arbitrary"),
                vmem_limit_bytes=_VMEM_LIMIT),
            cost_estimate=cost,
        )(a, b)
    if Mp != M:
        y = y[:M]
    return y


# ----------------------------------------------------------------------------
# Tiled per-channel affine (BN apply), residual add + ReLU fused, bf16 in/out.
# ----------------------------------------------------------------------------
def _row_tiles(rows, cp, itemsize=2):
    target = _TARGET_BLOCK_BYTES // (itemsize * cp)
    target = max(256, min(target, 4096))
    n_tiles = max(1, -(-rows // target))
    tr = _round_up(-(-rows // n_tiles), 16)
    return tr, tr * n_tiles


def _affine_kernel(x_ref, sc_ref, sh_ref, o_ref, *, relu):
    y = x_ref[...].astype(jnp.float32) * sc_ref[...] + sh_ref[...]
    if relu:
        y = jnp.maximum(y, 0.0)
    o_ref[...] = y.astype(o_ref.dtype)


def _affine_res_kernel(x_ref, r_ref, sc_ref, sh_ref, o_ref, *, relu):
    y = (x_ref[...].astype(jnp.float32) * sc_ref[...] + sh_ref[...]
         + r_ref[...].astype(jnp.float32))
    if relu:
        y = jnp.maximum(y, 0.0)
    o_ref[...] = y.astype(o_ref.dtype)


def _pallas_affine(x2, scale, shift, relu=False, residual=None):
    rows, cp = x2.shape
    tr, rows_p = _row_tiles(rows, cp)
    pad = rows_p - rows
    if pad:
        x2 = jnp.pad(x2, ((0, pad), (0, 0)))
        if residual is not None:
            residual = jnp.pad(residual, ((0, pad), (0, 0)))
    row_spec = pl.BlockSpec((tr, cp), lambda i: (i, 0))
    vec_spec = pl.BlockSpec((1, cp), lambda i: (0, 0))
    if residual is None:
        kernel = functools.partial(_affine_kernel, relu=relu)
        ins = (x2, scale, shift)
        in_specs = [row_spec, vec_spec, vec_spec]
    else:
        kernel = functools.partial(_affine_res_kernel, relu=relu)
        ins = (x2, residual, scale, shift)
        in_specs = [row_spec, row_spec, vec_spec, vec_spec]
    y = pl.pallas_call(
        kernel,
        out_shape=jax.ShapeDtypeStruct((rows_p, cp), jnp.bfloat16),
        grid=(rows_p // tr,),
        in_specs=in_specs,
        out_specs=row_spec,
        compiler_params=pltpu.CompilerParams(
            dimension_semantics=("parallel",),
            vmem_limit_bytes=_VMEM_LIMIT),
    )(*ins)
    if pad:
        y = y[:rows]
    return y


def batchnorm_apply(y, s, q, gamma, beta, eps=1e-5, relu=False, residual=None):
    """y: (N,H,W,Cp) bf16 conv output; s/q: (1,Cp) f32 per-channel sums from
    the matmul epilogue (over the true rows; padded rows contributed 0)."""
    n, h, w, cp = y.shape
    rows = n * h * w
    mean = s / float(rows)
    var = jnp.maximum(q / float(rows) - mean * mean, 0.0)  # biased (train BN)
    scale = gamma.reshape(1, cp) * lax.rsqrt(var + eps)
    shift = beta.reshape(1, cp) - mean * scale
    res2 = None if residual is None else residual.reshape(rows, cp)
    y2 = _pallas_affine(y.reshape(rows, cp), scale, shift, relu=relu,
                        residual=res2)
    return y2.reshape(n, h, w, cp)


# ----------------------------------------------------------------------------
# ILN (UGATIT rho-mixed instance/layer norm): two-pass, HW-tiled, ReLU fused.
# ----------------------------------------------------------------------------
def _iln_stats_kernel(x_ref, s_ref, q_ref):
    @pl.when(pl.program_id(1) == 0)
    def _():
        s_ref[...] = jnp.zeros_like(s_ref)
        q_ref[...] = jnp.zeros_like(q_ref)

    x = x_ref[...].astype(jnp.float32)
    s_ref[...] += jnp.sum(x, axis=1, keepdims=True)
    q_ref[...] += jnp.sum(x * x, axis=1, keepdims=True)


def _iln_affine_kernel(x_ref, a_ref, b_ref, o_ref, *, relu):
    y = x_ref[...].astype(jnp.float32) * a_ref[...] + b_ref[...]
    if relu:
        y = jnp.maximum(y, 0.0)
    o_ref[...] = y.astype(o_ref.dtype)


def pallas_iln(x, p, eps=1e-5, relu=True):
    # TODO(synk): ILN definition assumed from UGATIT (not in the snippet).
    n, h, w, cp = x.shape
    hw = h * w
    c = p["c"]
    x3 = x.reshape(n, hw, cp)
    thw, hwp = _row_tiles(hw, cp)
    if hwp != hw:
        x3 = jnp.pad(x3, ((0, 0), (0, hwp - hw), (0, 0)))

    s, q = pl.pallas_call(
        _iln_stats_kernel,
        out_shape=(jax.ShapeDtypeStruct((n, 1, cp), jnp.float32),
                   jax.ShapeDtypeStruct((n, 1, cp), jnp.float32)),
        grid=(n, hwp // thw),
        in_specs=[pl.BlockSpec((1, thw, cp), lambda i, t: (i, t, 0))],
        out_specs=(pl.BlockSpec((1, 1, cp), lambda i, t: (i, 0, 0)),
                   pl.BlockSpec((1, 1, cp), lambda i, t: (i, 0, 0))),
        compiler_params=pltpu.CompilerParams(
            dimension_semantics=("parallel", "arbitrary"),
            vmem_limit_bytes=_VMEM_LIMIT),
    )(x3)

    in_mean = s / float(hw)
    in_var = jnp.maximum(q / float(hw) - in_mean * in_mean, 0.0)
    if hw > 1:
        in_var = in_var * (float(hw) / float(hw - 1))          # unbiased
    n_ln = float(c * hw)
    tot = jnp.sum(s, axis=2, keepdims=True)       # padded channels sum to 0
    totq = jnp.sum(q, axis=2, keepdims=True)
    ln_mean = tot / n_ln
    ln_var = jnp.maximum(totq / n_ln - ln_mean * ln_mean, 0.0)
    if c * hw > 1:
        ln_var = ln_var * (n_ln / (n_ln - 1.0))                # unbiased

    rho = p["rho"].reshape(1, 1, cp)
    gamma = p["gamma"].reshape(1, 1, cp)
    beta = p["beta"].reshape(1, 1, cp)
    r_in = lax.rsqrt(in_var + eps)
    r_ln = lax.rsqrt(ln_var + eps)
    a_coef = gamma * (rho * r_in + (1.0 - rho) * r_ln)
    b_coef = beta - gamma * (rho * in_mean * r_in
                             + (1.0 - rho) * ln_mean * r_ln)

    y3 = pl.pallas_call(
        functools.partial(_iln_affine_kernel, relu=relu),
        out_shape=jax.ShapeDtypeStruct((n, hwp, cp), jnp.bfloat16),
        grid=(n, hwp // thw),
        in_specs=[pl.BlockSpec((1, thw, cp), lambda i, t: (i, t, 0)),
                  pl.BlockSpec((1, 1, cp), lambda i, t: (i, 0, 0)),
                  pl.BlockSpec((1, 1, cp), lambda i, t: (i, 0, 0))],
        out_specs=pl.BlockSpec((1, thw, cp), lambda i, t: (i, t, 0)),
        compiler_params=pltpu.CompilerParams(
            dimension_semantics=("parallel", "parallel"),
            vmem_limit_bytes=_VMEM_LIMIT),
    )(x3, a_coef, b_coef)
    if hwp != hw:
        y3 = y3[:, :hw]
    return y3.reshape(n, h, w, cp)


# ----------------------------------------------------------------------------
# Conv / conv-transpose / pooling / resize (NHWC bf16 glue + Pallas matmul)
# ----------------------------------------------------------------------------
def conv2d(x, cw, stride=1, padding=0, relu=False, bn_stats=False):
    """x: (N,H,W,C) bf16 NHWC (channel-padded).  cw: prepared weight dict."""
    n, h, w, cin = x.shape
    kh, kw = cw["kh"], cw["kw"]
    if x.dtype != jnp.bfloat16:
        x = x.astype(jnp.bfloat16)
    if padding:
        x = jnp.pad(x, ((0, 0), (padding, padding),
                        (padding, padding), (0, 0)))
    hp, wp = x.shape[1], x.shape[2]
    ho = (hp - kh) // stride + 1
    wo = (wp - kw) // stride + 1
    if kh == 1 and kw == 1:
        if stride != 1:
            x = x[:, ::stride, ::stride, :]
        patches = x.reshape(n * ho * wo, cin)
    else:
        # TODO(synk): im2col still materializes a kh*kw patch slab in HBM; a
        # direct halo'd Pallas conv kernel would remove this amplification.
        taps = []
        for i in range(kh):
            for j in range(kw):
                taps.append(x[:, i:i + stride * ho:stride,
                              j:j + stride * wo:stride, :])
        patches = jnp.concatenate(taps, axis=-1).reshape(
            n * ho * wo, cin * kh * kw)
    kp = cw["w"].shape[0]
    if patches.shape[1] != kp:
        patches = jnp.pad(patches, ((0, 0), (0, kp - patches.shape[1])))
    bias = cw["b"] if (cw["has_bias"] and not bn_stats) else None
    out = pallas_matmul(patches, cw["w"], bias=bias, relu=relu,
                        bn_stats=bn_stats)
    np_ = cw["w"].shape[1]
    if bn_stats:
        y, s, q = out
        return y.reshape(n, ho, wo, np_), s, q
    return out.reshape(n, ho, wo, np_)


def conv_bn(x, cw, bnp, stride=1, padding=0, eps=1e-5, relu=False,
            residual=None):
    """Conv + training-mode BatchNorm with the stats computed in the matmul
    epilogue.  Any conv bias is dropped: the batch-mean subtraction cancels it
    exactly, so the forward output is unchanged."""
    y, s, q = conv2d(x, cw, stride=stride, padding=padding, relu=False,
                     bn_stats=True)
    return batchnorm_apply(y, s, q, bnp["gamma"], bnp["beta"], eps=eps,
                           relu=relu, residual=residual)


def conv_transpose_2x2_s2(x, cw):
    """ConvTranspose2d(k=2,s=2,no bias) as one matmul against (Kp, 4*Coutp);
    pixel shuffle done on the bf16 matmul output."""
    n, h, w, cin = x.shape
    coutp = cw["coutp"]
    xf = x.reshape(n * h * w, cin)
    kp = cw["w"].shape[0]
    if cin != kp:
        xf = jnp.pad(xf, ((0, 0), (0, kp - cin)))
    y = pallas_matmul(xf, cw["w"])
    y = y.reshape(n, h, w, 2, 2, coutp)
    y = y.transpose(0, 1, 3, 2, 4, 5).reshape(n, 2 * h, 2 * w, coutp)
    return y


def maxpool_3x3_s2_p1(x):
    init = jnp.asarray(-jnp.inf, dtype=x.dtype)
    return lax.reduce_window(x, init, lax.max,
                             (1, 3, 3, 1), (1, 2, 2, 1),
                             [(0, 0), (1, 1), (1, 1), (0, 0)])


def global_max(x):
    return jnp.max(x, axis=(1, 2), keepdims=True)


def bilinear_resize_align_corners(x, oh, ow):
    n, h, w, c = x.shape

    def coords(o, i):
        if o <= 1 or i <= 1:
            return jnp.zeros((o,), jnp.float32)
        return jnp.linspace(0.0, float(i - 1), o)

    ys = coords(oh, h)
    xs = coords(ow, w)
    y0 = jnp.floor(ys).astype(jnp.int32)
    y1 = jnp.minimum(y0 + 1, h - 1)
    x0 = jnp.floor(xs).astype(jnp.int32)
    x1 = jnp.minimum(x0 + 1, w - 1)
    wy = (ys - y0.astype(jnp.float32)).reshape(1, oh, 1, 1).astype(x.dtype)
    wx = (xs - x0.astype(jnp.float32)).reshape(1, 1, ow, 1).astype(x.dtype)
    one = jnp.asarray(1.0, dtype=x.dtype)
    top = x[:, y0, :, :] * (one - wy) + x[:, y1, :, :] * wy
    out = top[:, :, x0, :] * (one - wx) + top[:, :, x1, :] * wx
    return out


# ----------------------------------------------------------------------------
# Deterministic parameter construction (weights pre-padded / matmul-ready)
# ----------------------------------------------------------------------------
_PARAM_KEY = jax.random.PRNGKey(42)


def _next_key():
    global _PARAM_KEY
    _PARAM_KEY, sub = jax.random.split(_PARAM_KEY)
    return sub


def _conv_torch_weight(o, c, kh, kw):
    std = (2.0 / (o * kh * kw)) ** 0.5                  # kaiming fan_out/relu
    return std * jax.random.normal(_next_key(), (o, c, kh, kw), jnp.float32)


def _conv_bias_vec(o):
    return 0.01 * jax.random.normal(_next_key(), (o,), jnp.float32)


def prep_conv(w, b, cin_in):
    o, cin, kh, kw = w.shape
    k = cin_in * kh * kw
    kp = _round_up(k, 128)
    np_ = _round_up(o, 128)
    wt = jnp.transpose(w, (2, 3, 1, 0))                  # (kh,kw,Cin,O)
    if cin_in > cin:
        wt = jnp.pad(wt, ((0, 0), (0, 0), (0, cin_in - cin), (0, 0)))
    wm = wt.reshape(k, o)
    wm = jnp.pad(wm, ((0, kp - k), (0, np_ - o)))
    if b is None:
        bias = jnp.zeros((np_,), jnp.float32)
        has_bias = False
    else:
        bias = jnp.pad(b, (0, np_ - o))
        has_bias = True
    return {"w": wm.astype(jnp.bfloat16), "b": bias, "kh": kh, "kw": kw,
            "has_bias": has_bias}


def make_conv(o, cin_true, kh, kw, cin_in=None, bias=False):
    cin_in = cin_in if cin_in is not None else _round_up(cin_true, 128)
    w = _conv_torch_weight(o, cin_true, kh, kw)
    b = _conv_bias_vec(o) if bias else None
    return prep_conv(w, b, cin_in)


def make_convtrans(cin, cout):
    std = (1.0 / (cin * 4)) ** 0.5
    w = std * jax.random.normal(_next_key(), (cin, cout, 2, 2), jnp.float32)
    kp = _round_up(cin, 128)
    coutp = _round_up(cout, 128)
    taps = []
    for di in range(2):
        for dj in range(2):
            taps.append(jnp.pad(w[:, :, di, dj],
                                ((0, kp - cin), (0, coutp - cout))))
    wm = jnp.concatenate(taps, axis=1)                   # (Kp, 4*Coutp)
    return {"w": wm.astype(jnp.bfloat16), "coutp": coutp}


def bn_params(c):
    cp = _round_up(c, 128)
    return {"gamma": jnp.pad(jnp.ones((c,), jnp.float32), (0, cp - c)),
            "beta": jnp.zeros((cp,), jnp.float32)}


def iln_params(c):
    cp = _round_up(c, 128)
    return {"rho": jnp.zeros((cp,), jnp.float32),
            "gamma": jnp.pad(jnp.ones((c,), jnp.float32), (0, cp - c)),
            "beta": jnp.zeros((cp,), jnp.float32),
            "c": c}


def make_bottleneck(inplanes, planes, stride, downsample):
    p = {"stride": stride,
         "conv1": make_conv(planes, inplanes, 1, 1), "bn1": bn_params(planes),
         "conv2": make_conv(planes, planes, 3, 3), "bn2": bn_params(planes),
         "conv3": make_conv(planes * 4, planes, 1, 1),
         "bn3": bn_params(planes * 4)}
    if downsample:
        p["down_conv"] = make_conv(planes * 4, inplanes, 1, 1)
        p["down_bn"] = bn_params(planes * 4)
    return p


def make_resnet50(in_ch):
    # TODO(synk): resnet_50() source not provided; standard ResNet-50 assumed.
    params = {"conv1": make_conv(64, in_ch, 7, 7, cin_in=in_ch),
              "bn1": bn_params(64)}
    layers = []
    inplanes = 64
    for planes, n_blocks, stride in [(64, 3, 1), (128, 4, 2),
                                     (256, 6, 2), (512, 3, 2)]:
        blocks = []
        for b in range(n_blocks):
            s = stride if b == 0 else 1
            blocks.append(make_bottleneck(inplanes, planes, s, b == 0))
            inplanes = planes * 4
        layers.append(blocks)
    params["layers"] = layers
    return params


def make_mynet_params(num_classes=37):
    P = {"num_classes": num_classes,
         "rgb_backbone": make_resnet50(3),
         "depth_backbone": make_resnet50(1),
         "conv1_d": make_conv(64, 1, 7, 7, cin_in=1)}
    nf = 2048
    P["merge_conv1"] = make_conv(nf // 2, nf, 1, 1, bias=True)
    P["merge_bn1"] = bn_params(nf // 2)
    P["merge_conv2"] = make_conv(nf // 2, nf // 2, 1, 1, bias=True)
    P["merge_conv1_d"] = make_conv(nf // 2, nf, 1, 1, bias=True)
    P["merge_bn1_d"] = bn_params(nf // 2)
    P["merge_conv2_d"] = make_conv(nf // 2, nf // 2, 1, 1, bias=True)
    P["merge_conv1x1"] = make_conv(nf // 2, nf // 2, 1, 1, bias=True)
    P["merge_conv3"] = make_conv(nf // 2, nf // 2, 1, 1, bias=True)
    P["merge_conv4"] = make_conv(nf // 4, nf // 2, 1, 1, bias=True)
    ups = []
    for i in range(1, 5):
        cin = nf // (2 * 2 ** i)
        cout = nf // (2 * 2 ** (i + 1))
        ups.append({"w": make_convtrans(cin, cout), "iln": iln_params(cout)})
    P["ups"] = ups
    finals = []
    for i in range(1, 5):
        cin = nf // (4 * 2 ** i)
        finals.append(make_conv(num_classes, cin, 1, 1, bias=True))
    P["finals"] = finals
    return P


# ----------------------------------------------------------------------------
# Forward pass (NHWC, bf16, channel-padded activations)
# ----------------------------------------------------------------------------
def bottleneck_forward(x, p):
    identity = x
    out = conv_bn(x, p["conv1"], p["bn1"], relu=True)
    out = conv_bn(out, p["conv2"], p["bn2"], stride=p["stride"], padding=1,
                  relu=True)
    if "down_conv" in p:
        identity = conv_bn(x, p["down_conv"], p["down_bn"],
                           stride=p["stride"], relu=False)
    # conv3 stats fused in the matmul epilogue; bn3 + residual + ReLU fused
    # in the affine pass.
    return conv_bn(out, p["conv3"], p["bn3"], relu=True, residual=identity)


def encoder(rgb, depth, P):
    rb, db = P["rgb_backbone"], P["depth_backbone"]
    r = conv_bn(rgb, rb["conv1"], rb["bn1"], stride=2, padding=3, relu=True)
    d = conv_bn(depth, P["conv1_d"], db["bn1"], stride=2, padding=3,
                relu=True)                              # hha=False path
    r = maxpool_3x3_s2_p1(r)
    d = maxpool_3x3_s2_p1(d)
    for layer in rb["layers"]:
        for blk in layer:
            r = bottleneck_forward(r, blk)
    for layer in db["layers"]:
        for blk in layer:
            d = bottleneck_forward(d, blk)
    return r, d


def merge(f_rgb, f_depth, P):
    f_rgb = conv_bn(f_rgb, P["merge_conv1"], P["merge_bn1"], eps=3e-4)
    a_rgb = jax.nn.sigmoid(conv2d(global_max(f_rgb), P["merge_conv2"]))
    f_rgb = f_rgb * a_rgb.astype(f_rgb.dtype)
    f_depth = conv_bn(f_depth, P["merge_conv1_d"], P["merge_bn1_d"], eps=3e-4)
    a_depth = jax.nn.sigmoid(conv2d(global_max(f_depth), P["merge_conv2_d"]))
    f_depth = f_depth * a_depth.astype(f_depth.dtype)
    f_merge = conv2d(f_rgb + f_depth, P["merge_conv1x1"], relu=True)
    a_merge = jax.nn.sigmoid(conv2d(global_max(f_merge), P["merge_conv3"]))
    f_merge = f_merge * a_merge.astype(f_merge.dtype)
    f_merge = conv2d(f_merge, P["merge_conv4"], relu=True)
    return f_merge


def decoder(f, P):
    feats = []
    for up in P["ups"]:
        f = conv_transpose_2x2_s2(f, up["w"])
        f = pallas_iln(f, up["iln"], relu=True)
        feats.append(f)
    return feats


def mynet_forward(rgb_nchw, depth_nchw, P, phase="train"):
    H, W = rgb_nchw.shape[2], rgb_nchw.shape[3]
    rgb = jnp.transpose(rgb_nchw, (0, 2, 3, 1)).astype(jnp.bfloat16)
    depth = jnp.transpose(depth_nchw, (0, 2, 3, 1)).astype(jnp.bfloat16)
    f_rgb, f_depth = encoder(rgb, depth, P)
    feats = decoder(merge(f_rgb, f_depth, P), P)
    nc = P["num_classes"]

    def head(feat, size, cw):
        f = bilinear_resize_align_corners(feat, size[0], size[1])
        y = conv2d(f, cw)                     # bias fused in matmul epilogue
        y = y[..., :nc].astype(jnp.float32)   # drop padded output channels
        return jnp.transpose(y, (0, 3, 1, 2))

    if phase in ("train", "val"):
        sizes = [(H // 8, W // 8), (H // 4, W // 4), (H // 2, W // 2), (H, W)]
        outs = [head(feats[i], sizes[i], P["finals"][i]) for i in range(4)]
        return [outs[3], outs[2], outs[1], outs[0]]   # [out4, out3, out2, out1]
    return head(feats[3], (H, W), P["finals"][3])


# ----------------------------------------------------------------------------
if __name__ == "__main__":
    key = jax.random.PRNGKey(0)
    k_rgb, k_depth = jax.random.split(key)
    rgb = jax.random.normal(k_rgb, (2, 3, 64, 64), jnp.float32)
    depth = jax.random.normal(k_depth, (2, 1, 64, 64), jnp.float32)

    params = make_mynet_params(num_classes=37)
    outs = mynet_forward(rgb, depth, params, phase="train")
    for o in outs:
        jax.block_until_ready(o)
    assert outs[0].shape == (2, 37, 64, 64)
    assert outs[1].shape == (2, 37, 32, 32)
    assert outs[2].shape == (2, 37, 16, 16)
    assert outs[3].shape == (2, 37, 8, 8)
    print("KERNEL_OK")
</pallas_src>

<mosaic_0001>
module attributes {stable_mosaic.version = 11 : i64} {
  func.func @_mm_stats_kernel(%arg0: i32, %arg1: i32, %arg2: i32, %arg3: memref<512x256xbf16, #tpu.memory_space<vmem>>, %arg4: memref<256x128xbf16, #tpu.memory_space<vmem>>, %arg5: memref<512x128xbf16, #tpu.memory_space<vmem>>, %arg6: memref<1x128xf32, #tpu.memory_space<vmem>>, %arg7: memref<1x128xf32, #tpu.memory_space<vmem>>, %arg8: memref<512x128xf32, #tpu.memory_space<vmem>>) attributes {dimension_semantics = [#tpu.dimension_semantics<parallel>, #tpu.dimension_semantics<arbitrary>, #tpu.dimension_semantics<arbitrary>], iteration_bounds = array<i64: 1, 4, 1>, scalar_prefetch = 0 : i64, scratch_operands = 1 : i64, tpu.core_type = #tpu.core_type<tc>, window_params = [{transform_indices = @transform_0, window_bounds = array<i64: 512, 256>}, {transform_indices = @transform_1, window_bounds = array<i64: 256, 128>}, {transform_indices = @transform_2, window_bounds = array<i64: 512, 128>}, {transform_indices = @transform_3, window_bounds = array<i64: 1, 128>}, {transform_indices = @transform_4, window_bounds = array<i64: 1, 128>}]} {
    %c0_i32 = arith.constant 0 : i32
    %0 = arith.cmpi eq, %arg2, %c0_i32 : i32
    %1 = arith.extui %0 : i1 to i32
    %c0_i32_0 = arith.constant 0 : i32
    %2 = arith.cmpi ne, %1, %c0_i32_0 : i32
    scf.if %2 {
      %cst_13 = arith.constant 0.000000e+00 : f32
      %17 = vector.broadcast %cst_13 : f32 to vector<512x128xf32>
      %c0_14 = arith.constant 0 : index
      %c0_15 = arith.constant 0 : index
      %18 = vector.load %arg8[%c0_14, %c0_15] : memref<512x128xf32, #tpu.memory_space<vmem>>, vector<512x128xf32>
      tpu.vector_store %arg8[%c0_14, %c0_15], %17 {strides = array<i32>} : memref<512x128xf32, #tpu.memory_space<vmem>>, vector<512x128xf32>,
    } else {
    }
    %c0_i32_1 = arith.constant 0 : i32
    %3 = arith.cmpi eq, %arg1, %c0_i32_1 : i32
    %c0_i32_2 = arith.constant 0 : i32
    %4 = arith.cmpi eq, %arg2, %c0_i32_2 : i32
    %5 = arith.andi %3, %4 : i1
    %6 = arith.extui %5 : i1 to i32
    %c0_i32_3 = arith.constant 0 : i32
    %7 = arith.cmpi ne, %6, %c0_i32_3 : i32
    scf.if %7 {
      %cst_13 = arith.constant 0.000000e+00 : f32
      %17 = vector.broadcast %cst_13 : f32 to vector<1x128xf32>
      %c0_14 = arith.constant 0 : index
      %c0_15 = arith.constant 0 : index
      %18 = vector.load %arg6[%c0_14, %c0_15] : memref<1x128xf32, #tpu.memory_space<vmem>>, vector<1x128xf32>
      tpu.vector_store %arg6[%c0_14, %c0_15], %17 {strides = array<i32>} : memref<1x128xf32, #tpu.memory_space<vmem>>, vector<1x128xf32>,
      %cst_16 = arith.constant 0.000000e+00 : f32
      %19 = vector.broadcast %cst_16 : f32 to vector<1x128xf32>
      %c0_17 = arith.constant 0 : index
      %c0_18 = arith.constant 0 : index
      %20 = vector.load %arg7[%c0_17, %c0_18] : memref<1x128xf32, #tpu.memory_space<vmem>>, vector<1x128xf32>
      tpu.vector_store %arg7[%c0_17, %c0_18], %19 {strides = array<i32>} : memref<1x128xf32, #tpu.memory_space<vmem>>, vector<1x128xf32>,
    } else {
    }
    %c0 = arith.constant 0 : index
    %c0_4 = arith.constant 0 : index
    %8 = vector.load %arg8[%c0, %c0_4] : memref<512x128xf32, #tpu.memory_space<vmem>>, vector<512x128xf32>
    %c0_5 = arith.constant 0 : index
    %c0_6 = arith.constant 0 : index
    %9 = vector.load %arg3[%c0_5, %c0_6] : memref<512x256xbf16, #tpu.memory_space<vmem>>, vector<512x256xbf16>
    %c0_7 = arith.constant 0 : index
    %c0_8 = arith.constant 0 : index
    %10 = vector.load %arg4[%c0_7, %c0_8] : memref<256x128xbf16, #tpu.memory_space<vmem>>, vector<256x128xbf16>
    %cst = arith.constant dense<0.000000e+00> : vector<512x128xf32>
    %11 = tpu.matmul %9, %10, %cst {dimension_numbers = #tpu.dot_dimension_numbers<[1], [0], [0], [1], [0, 0, 1, 1], [], []>} : vector<512x256xbf16>, vector<256x128xbf16>, vector<512x128xf32> -> vector<512x128xf32>
    %12 = arith.addf %8, %11 : vector<512x128xf32>
    %c0_9 = arith.constant 0 : index
    %c0_10 = arith.constant 0 : index
    %13 = vector.load %arg8[%c0_9, %c0_10] : memref<512x128xf32, #tpu.memory_space<vmem>>, vector<512x128xf32>
    tpu.vector_store %arg8[%c0_9, %c0_10], %12 {strides = array<i32>} : memref<512x128xf32, #tpu.memory_space<vmem>>, vector<512x128xf32>,
    %c0_i32_11 = arith.constant 0 : i32
    %14 = arith.cmpi eq, %arg2, %c0_i32_11 : i32
    %15 = arith.extui %14 : i1 to i32
    %c0_i32_12 = arith.constant 0 : i32
    %16 = arith.cmpi ne, %15, %c0_i32_12 : i32
    scf.if %16 {
      %c0_13 = arith.constant 0 : index
      %c0_14 = arith.constant 0 : index
      %17 = vector.load %arg8[%c0_13, %c0_14] : memref<512x128xf32, #tpu.memory_space<vmem>>, vector<512x128xf32>
      %18 = arith.truncf %17 : vector<512x128xf32> to vector<512x128xbf16>
      %c0_15 = arith.constant 0 : index
      %c0_16 = arith.constant 0 : index
      %19 = vector.load %arg5[%c0_15, %c0_16] : memref<512x128xbf16, #tpu.memory_space<vmem>>, vector<512x128xbf16>
      tpu.vector_store %arg5[%c0_15, %c0_16], %18 {strides = array<i32>} : memref<512x128xbf16, #tpu.memory_space<vmem>>, vector<512x128xbf16>,
      %c0_17 = arith.constant 0 : index
      %c0_18 = arith.constant 0 : index
      %20 = vector.load %arg6[%c0_17, %c0_18] : memref<1x128xf32, #tpu.memory_space<vmem>>, vector<1x128xf32>
      %cst_19 = arith.constant dense<0.000000e+00> : vector<128xf32>
      %21 = vector.multi_reduction <add>, %17, %cst_19 [0] : vector<512x128xf32> to vector<128xf32>
      %22 = vector.shape_cast %21 : vector<128xf32> to vector<1x128xf32>
      %23 = arith.addf %20, %22 : vector<1x128xf32>
      %c0_20 = arith.constant 0 : index
      %c0_21 = arith.constant 0 : index
      %24 = vector.load %arg6[%c0_20, %c0_21] : memref<1x128xf32, #tpu.memory_space<vmem>>, vector<1x128xf32>
      tpu.vector_store %arg6[%c0_20, %c0_21], %23 {strides = array<i32>} : memref<1x128xf32, #tpu.memory_space<vmem>>, vector<1x128xf32>,
      %c0_22 = arith.constant 0 : index
      %c0_23 = arith.constant 0 : index
      %25 = vector.load %arg7[%c0_22, %c0_23] : memref<1x128xf32, #tpu.memory_space<vmem>>, vector<1x128xf32>
      %26 = arith.mulf %17, %17 : vector<512x128xf32>
      %cst_24 = arith.constant dense<0.000000e+00> : vector<128xf32>
      %27 = vector.multi_reduction <add>, %26, %cst_24 [0] : vector<512x128xf32> to vector<128xf32>
      %28 = vector.shape_cast %27 : vector<128xf32> to vector<1x128xf32>
      %29 = arith.addf %25, %28 : vector<1x128xf32>
      %c0_25 = arith.constant 0 : index
      %c0_26 = arith.constant 0 : index
      %30 = vector.load %arg7[%c0_25, %c0_26] : memref<1x128xf32, #tpu.memory_space<vmem>>, vector<1x128xf32>
      tpu.vector_store %arg7[%c0_25, %c0_26], %29 {strides = array<i32>} : memref<1x128xf32, #tpu.memory_space<vmem>>, vector<1x128xf32>,
    } else {
    }
    return
  }
  func.func @transform_0(%arg0: i32, %arg1: i32, %arg2: i32) -> (i32, i32) {
    %c0_i32 = arith.constant 0 : i32
    return %arg1, %arg2 : i32, i32
  }
  func.func @transform_1(%arg0: i32, %arg1: i32, %arg2: i32) -> (i32, i32) {
    %c0_i32 = arith.constant 0 : i32
    return %arg2, %arg0 : i32, i32
  }
  func.func @transform_2(%arg0: i32, %arg1: i32, %arg2: i32) -> (i32, i32) {
    %c0_i32 = arith.constant 0 : i32
    return %arg1, %arg0 : i32, i32
  }
  func.func @transform_3(%arg0: i32, %arg1: i32, %arg2: i32) -> (i32, i32) {
    %c0_i32 = arith.constant 0 : i32
    %c0_i32_0 = arith.constant 0 : i32
    return %c0_i32, %arg0 : i32, i32
  }
  func.func @transform_4(%arg0: i32, %arg1: i32, %arg2: i32) -> (i32, i32) {
    %c0_i32 = arith.constant 0 : i32
    %c0_i32_0 = arith.constant 0 : i32
    return %c0_i32, %arg0 : i32, i32
  }
}

</mosaic_0001>

<bundles_post_ra>
// kernel: tpu_custom_call.1
= control target key start
LH: loop header
LB: loop body
LE: loop exit
PB: predicated region body
PF: predicated region fallthrough
CT: control target
= control target key end

     0   :  { %s3814_s0 = inlined_call_operand.hbm [shape: bf16[2048,256], index: 0, kind: input, shape index: {}]   ;;  %s3815_s1 = inlined_call_operand.hbm [shape: bf16[256,128], index: 1, kind: input, shape index: {}]   ;;  %s3816_s2 = inlined_call_operand.hbm [shape: bf16[2048,128], index: 2, kind: output, shape index: {0}]   ;;  %s3817_s3 = inlined_call_operand.hbm [shape: f32[1,128], index: 3, kind: output, shape index: {1}]   ;;  %s3818_s4 = inlined_call_operand.hbm [shape: f32[1,128], index: 4, kind: output, shape index: {2}]  }
   0x1   :  { %3823 = sst [smem:[#allocation17_spill]] %s3815_s1 }
   0x2   :  { %10 = vsyncpa [#allocation4], 0 }
   0x3   :  { %12 = vsyncpa [#allocation4 + $0x1], 0 }
   0x4   :  { %13 = vsyncpa [#allocation7], 0 }
   0x5   :  { %14 = vsyncpa [#allocation5], 0 }
   0x6   :  { %16 = vsyncpa [#allocation5 + $0x1], 0 }
   0x7   :  { %17 = vsyncpa [#allocation10], 0  ;;  %s3008_s15 = smov 0   ;;  %s3010_s16 = smov 0  }
   0x8   :  { %s3012_s17 = smov 0   ;;  %s3014_s18 = smov 0  }
   0x9   :  { %s3016_s19 = smov 0   ;;  %s3018_s20 = smov 0  }
   0xa LB: > { %s2111_s21 = sadd.s32 4294967295, %s2967_s20   ;;  %s2112_s22 = sadd.s32 4294967294, %s2967_s20   ;;  %s2967_s20 = sphi %s3018_s20, %s23_s20   ;;  %s2963_s19 = sphi %s3016_s19, %s3843_s19   ;;  %s2959_s18 = sphi %s3014_s18, %s3842_s18   ;;  %s2955_s17 = sphi %s3012_s17, %s3841_s17   ;;  %s2951_s16 = sphi %s3010_s16, %s3840_s16   ;;  %s2947_s15 = sphi %s3008_s15, %s3839_s15  }
   0xb   : > { %p64_p0 = scmp.ne.s32.totalorder %s2951_s16, %s2947_s15  ;;  %p3042_p1 = scmp.eq.s32.totalorder %s2111_s21, 0 }
   0xc   : > { %p3046_p2 = scmp.eq.s32.totalorder %s2111_s21, 3  ;;  %p124_p3 = scmp.eq.s32.totalorder %s2112_s22, 3 }
   0xd   : > { %p3052_p4 = por %p3042_p1, %p64_p0  ;;  %p2113_p5 = scmp.ge.s32.totalorder %s2967_s20, 1 }
   0xe   : > { %s3825_s24 = scalar_select %p3046_p2, 1, 0 }
   0xf   : > { %p3057_p6 = por %p124_p3, %p64_p0  ;;  %p183_p7 = scmp.lt.s32.totalorder %s2967_s20, 5 }
  0x10   : > { %s2969_s28 = smov [#allocation6]   ;;  %s38_s5 = sadd.s32 1, %s2963_s19 }
  0x11   : > { %s3827_s26 = scalar_select %p3057_p6, 1, 0 }
  0x12   : > { %p3062_p8 = pnand %p2113_p5, %p183_p7  ;;  %s199_s29 = sshll.u32 %s2969_s28, 4  ;;  %s200_s29 = int_to_ptr.vmem [resolvable:$true] %s199_s29 }
  0x13   : > { %s2788_s6 = scalar_lea.vmem %s200_s29, 2048  ;;  %p2796_p3 = scmp.lt.s32.totalorder %s200_s29, %s200_s29 }
  0x14   : > { %p2585_p9 = pneg %p3062_p8  ;;  %p2789_p12 = scmp.ne.s32.totalorder %s200_s29, %s2788_s6 }
  0x15   : > { %p2797_p5 = scmp.lt.s32.totalorder %s2788_s6, %s2788_s6 }
  0x16   : > { %p3070_p10 = pnand %p2585_p9, %p3042_p1 }
  0x17   : > { %p2798_p7 = por %p2797_p5, %p2796_p3 }
  0x18   : > { %p2779_p11 = pneg %p3070_p10 }
  0x1a   : > { %p2791_p13 = pnand %p2789_p12, %p2779_p11 }
  0x1c   : > { %p2792_p0 = pneg %p2791_p13 }
  0x1e   : > { %p2799_p6 = pnand %p2798_p7, %p2792_p0 }
  0x20   : > { %2802 = shalt.err (!%p2799_p6)
}
  0x21   : > { %s2970_s7 = smov 64   ;;  %s2971_s8 = smov 4  }
  0x22   : > { %s3830_s1 = sld [smem:[#allocation17_spill]]  ;;  %p40_p9 = scmp.ge.s32.totalorder %s38_s5, 4 }
  0x23   : > { %s51_s11 = sadd.s32 1, %s2955_s17  ;;  %p58_p6 = scmp.ne.s32.totalorder %s2955_s17, %s2951_s16 }
  0x24   : > { %p59_p11 = scmp.eq.s32.totalorder %s2967_s20, 0  ;;  %s3845_s5 = smov (%p40_p9, %s38_s5), 0 }
  0x25   : > { %3831 = sst [smem:[#allocation16_spill]] %s3845_s5  ;;  %p3094_p13 = por %p3046_p2, %p58_p6 }
  0x26   : > { %p3088_p12 = por %p59_p11, %p58_p6  ;;  %s46_s14 = ssub.s32 %s2963_s19, %s3845_s5 }
  0x27   : > { %s3833_s13 = scalar_select %p3094_p13, 1, 0 }
  0x28   : > { %2588 = dma.hbm_to_vmem [thread:$0]  (!%p3070_p10), %s3830_s1, 2048, %s200_s29, [#allocation7], %s2970_s7, %s2970_s7, %s2971_s8  }
  0x29   : > { %p2598_p0 = scmp.lt.s32.totalorder %s2967_s20, 4  ;;  %p49_p10 = scmp.eq.s32.totalorder %s46_s14, 0 }
  0x2a   : > { %s213_s21 = sand.u32 1, %s2955_s17   ;;  %s2279_s29 = sshll.u32 %s2963_s19, 13 }
  0x2b   : > { %s2116_s22 = sshll.u32 %s213_s21, 9  ;;  %s226_s7 = scalar_lea.hbm %s3814_s0, %s2279_s29 }
  0x2c   : > { %s3103_s28 = scalar_select %p49_p10, %s2955_s17, %s51_s11  }
  0x2d   : > { %s217_s8 = scalar_lea.vmem [#allocation3], %s2116_s22  ;;  %p3111_p3 = pnand %p2598_p0, %p3088_p12 }
  0x2e   : > { %s227_s9 = sshll.u32 %s217_s8, 4  ;;  %s214_s1 = scalar_lea.sflag [#allocation4], %s213_s21  ;;  %s228_s9 = int_to_ptr.vmem [resolvable:$true] %s227_s9 }
  0x2f   : > { %p2805_p5 = pneg %p3111_p3  ;;  %s2816_s14 = scalar_lea.vmem %s228_s9, 8192 }
  0x30   : > { %p2817_p7 = scmp.ne.s32.totalorder %s228_s9, %s2816_s14  ;;  %s2972_s11 = smov [#allocation3]  }
  0x31   : > { %s2821_s5 = sshll.u32 %s2972_s11, 4  ;;  %s2822_s5 = int_to_ptr.vmem [resolvable:$false] %s2821_s5 }
  0x32   : > { %p2819_p9 = pnand %p2817_p7, %p2805_p5  ;;  %s2823_s29 = scalar_lea.vmem %s2822_s5, 16384 }
  0x33   : > { %p2824_p11 = scmp.lt.s32.totalorder %s228_s9, %s2822_s5  ;;  %p2825_p10 = scmp.lt.s32.totalorder %s2823_s29, %s2816_s14 }
  0x34   : > { %p2820_p6 = pneg %p2819_p9 }
  0x35   : > { %p2826_p2 = por %p2825_p10, %p2824_p11 }
  0x37   : > { %p2827_p13 = pnand %p2826_p2, %p2820_p6 }
  0x39   : > { %2830 = shalt.err (!%p2827_p13)
}
  0x3a   : > { %s2973_s12 = smov 128   ;;  %s2974_s22 = smov 8  }
  0x3b   : > { %2592 = dma.hbm_to_vmem [thread:$0]  (!%p3111_p3), %s226_s7, 8192, %s228_s9, %s214_s1, %s2973_s12, %s2973_s12, %s2974_s22  }
  0x3c   : > { %239 = sbr.rel (%p3062_p8) target bundleno = 593 (0x251), region = 28  ;;  %s3122_s21 = sand.u32 (!%p3062_p8), 1, %s2951_s16  }
  0x3d   : > { %s2121_s30 = sshll.u32 (!%p3062_p8), %s3122_s21, 9  ;;  %s242_s5 = scalar_lea.sflag (!%p3062_p8), [#allocation4], %s3122_s21 }
  0x3e   : > { %s3126_s6 = scalar_lea.vmem (!%p3062_p8), [#allocation3], %s2121_s30 }
  0x41   : > { %2930 = dma.done.wait (%p3052_p4), %s242_s5, 8192  }
  0x42   : > { %2932 = vsyncadd (%p3052_p4), %s242_s5, 4294959104 }
  0x43   : > { %2934 = dma.done.wait (%p3042_p1), [#allocation7], 2048  }
  0x44   : > { %2936 = vsyncadd (%p3042_p1), [#allocation7], 4294965248  ;;  %s2123_s1 = sshll.u32 %s3122_s21, 8  ;;  %p347_p2 = scmp.eq.s32.totalorder %s2959_s18, 0  ;;  %v2975_v0 = vmov 0.0  }
  0x45   : > { %283 = vst [vmem:[#allocation2 + $0xb0] sm:$0xff] %v2975_v0  ;;  %284 = vst [vmem:[#allocation2 + $0x1b0] sm:$0xff] %v2975_v0  ;;  %s3204_s23 = scalar_lea.vmem [#allocation8], %s2123_s1  ;;  %v2976_v1 = vmov (%p347_p2), 0.0  }
  0x46   : > { %285 = vst [vmem:[#allocation2 + $0xd8] sm:$0xff] %v2975_v0  ;;  %286 = vst [vmem:[#allocation2 + $0x18] sm:$0xff] %v2975_v0 }
  0x47   : > { %287 = vst [vmem:[#allocation2 + $0x50] sm:$0xff] %v2975_v0  ;;  %288 = vst [vmem:[#allocation2 + $0x168] sm:$0xff] %v2975_v0 }
  0x48   : > { %289 = vst [vmem:[#allocation2 + $0x130] sm:$0xff] %v2975_v0  ;;  %290 = vst [vmem:[#allocation2 + $0x48] sm:$0xff] %v2975_v0 }
  0x49   : > { %291 = vst [vmem:[#allocation2 + $0x180] sm:$0xff] %v2975_v0  ;;  %292 = vst [vmem:[#allocation2 + $0x110] sm:$0xff] %v2975_v0 }
  0x4a   : > { %293 = vst [vmem:[#allocation2 + $0x118] sm:$0xff] %v2975_v0  ;;  %294 = vst [vmem:[#allocation2 + $0x98] sm:$0xff] %v2975_v0 }
  0x4b   : > { %295 = vst [vmem:[#allocation2 + $0x120] sm:$0xff] %v2975_v0  ;;  %296 = vst [vmem:[#allocation2 + $0x150] sm:$0xff] %v2975_v0 }
  0x4c   : > { %297 = vst [vmem:[#allocation2 + $0x108] sm:$0xff] %v2975_v0  ;;  %298 = vst [vmem:[#allocation2 + $0x60] sm:$0xff] %v2975_v0 }
  0x4d   : > { %299 = vst [vmem:[#allocation2 + $0xe0] sm:$0xff] %v2975_v0  ;;  %300 = vst [vmem:[#allocation2 + $0x188] sm:$0xff] %v2975_v0 }
  0x4e   : > { %301 = vst [vmem:[#allocation2 + $0x138] sm:$0xff] %v2975_v0  ;;  %302 = vst [vmem:[#allocation2 + $0x140] sm:$0xff] %v2975_v0 }
  0x4f   : > { %303 = vst [vmem:[#allocation2 + $0x80] sm:$0xff] %v2975_v0  ;;  %304 = vst [vmem:[#allocation2 + $0x1a8] sm:$0xff] %v2975_v0 }
  0x50   : > { %305 = vst [vmem:[#allocation2 + $0x1b8] sm:$0xff] %v2975_v0  ;;  %306 = vst [vmem:[#allocation2 + $0x28] sm:$0xff] %v2975_v0 }
  0x51   : > { %307 = vst [vmem:[#allocation2 + $0x1e8] sm:$0xff] %v2975_v0  ;;  %308 = vst [vmem:[#allocation2 + $0xf8] sm:$0xff] %v2975_v0 }
  0x52   : > { %309 = vst [vmem:[#allocation2 + $0x160] sm:$0xff] %v2975_v0  ;;  %310 = vst [vmem:[#allocation2 + $0x30] sm:$0xff] %v2975_v0 }
  0x53   : > { %311 = vst [vmem:[#allocation2 + $0x1e0] sm:$0xff] %v2975_v0  ;;  %312 = vst [vmem:[#allocation2] sm:$0xff] %v2975_v0 }
  0x54   : > { %313 = vst [vmem:[#allocation2 + $0xf0] sm:$0xff] %v2975_v0  ;;  %314 = vst [vmem:[#allocation2 + $0x8] sm:$0xff] %v2975_v0 }
  0x55   : > { %315 = vst [vmem:[#allocation2 + $0x148] sm:$0xff] %v2975_v0  ;;  %316 = vst [vmem:[#allocation2 + $0x1d0] sm:$0xff] %v2975_v0 }
  0x56   : > { %317 = vst [vmem:[#allocation2 + $0x100] sm:$0xff] %v2975_v0  ;;  %318 = vst [vmem:[#allocation2 + $0xc8] sm:$0xff] %v2975_v0 }
  0x57   : > { %319 = vst [vmem:[#allocation2 + $0x40] sm:$0xff] %v2975_v0  ;;  %320 = vst [vmem:[#allocation2 + $0x1f8] sm:$0xff] %v2975_v0 }
  0x58   : > { %321 = vst [vmem:[#allocation2 + $0x20] sm:$0xff] %v2975_v0  ;;  %322 = vst [vmem:[#allocation2 + $0x128] sm:$0xff] %v2975_v0 }
  0x59   : > { %323 = vst [vmem:[#allocation2 + $0x1a0] sm:$0xff] %v2975_v0  ;;  %324 = vst [vmem:[#allocation2 + $0x1f0] sm:$0xff] %v2975_v0 }
  0x5a   : > { %325 = vst [vmem:[#allocation2 + $0xe8] sm:$0xff] %v2975_v0  ;;  %326 = vst [vmem:[#allocation2 + $0x78] sm:$0xff] %v2975_v0 }
  0x5b   : > { %327 = vst [vmem:[#allocation2 + $0x70] sm:$0xff] %v2975_v0  ;;  %328 = vst [vmem:[#allocation2 + $0x90] sm:$0xff] %v2975_v0 }
  0x5c   : > { %329 = vst [vmem:[#allocation2 + $0x1d8] sm:$0xff] %v2975_v0  ;;  %330 = vst [vmem:[#allocation2 + $0xd0] sm:$0xff] %v2975_v0 }
  0x5d   : > { %331 = vst [vmem:[#allocation2 + $0xb8] sm:$0xff] %v2975_v0  ;;  %332 = vst [vmem:[#allocation2 + $0x88] sm:$0xff] %v2975_v0 }
  0x5e   : > { %333 = vst [vmem:[#allocation2 + $0xa8] sm:$0xff] %v2975_v0  ;;  %334 = vst [vmem:[#allocation2 + $0x1c8] sm:$0xff] %v2975_v0 }
  0x5f   : > { %335 = vst [vmem:[#allocation2 + $0x170] sm:$0xff] %v2975_v0  ;;  %336 = vst [vmem:[#allocation2 + $0x178] sm:$0xff] %v2975_v0 }
  0x60   : > { %337 = vst [vmem:[#allocation2 + $0x68] sm:$0xff] %v2975_v0  ;;  %338 = vst [vmem:[#allocation2 + $0x190] sm:$0xff] %v2975_v0  ;;  %351 = sbr.rel (!%p347_p2) target bundleno = 102 (0x66), region = 44 }
  0x61   : > { %339 = vst [vmem:[#allocation2 + $0x198] sm:$0xff] %v2975_v0  ;;  %340 = vst [vmem:[#allocation2 + $0x38] sm:$0xff] %v2975_v0 }
  0x62   : > { %341 = vst [vmem:[#allocation2 + $0xc0] sm:$0xff] %v2975_v0  ;;  %342 = vst [vmem:[#allocation2 + $0x1c0] sm:$0xff] %v2975_v0 }
  0x63   : > { %343 = vst [vmem:[#allocation2 + $0x158] sm:$0xff] %v2975_v0  ;;  %344 = vst [vmem:[#allocation2 + $0x10] sm:$0xff] %v2975_v0 }
  0x64   : > { %345 = vst [vmem:[#allocation2 + $0x58] sm:$0xff] %v2975_v0  ;;  %346 = vst [vmem:[#allocation2 + $0xa0] sm:$0xff] %v2975_v0 }
  0x65   : > { %352 = vst [vmem:[#allocation9] sm:$0x1] %v2976_v1  ;;  %353 = vst [vmem:[#allocation11] sm:$0x1] %v2976_v1 }
  0x66 PF: > { %v2665_v2 = vld [vmem:[#allocation6 + $0x38] sm:$0xff]   ;;  %v2977_v3 = vmov 0   ;;  %v2666_v4 = vld [vmem:[#allocation6 + $0x30] sm:$0xff]   ;;  %v2667_v5 = vld [vmem:[#allocation6 + $0x28] sm:$0xff]   ;;  %s2345_s25 = sshll.u32 %s2959_s18, 12  ;;  %s1957_s27 = sshll.u32 %s3204_s23, 4  ;;  %s3648_s27 = int_to_ptr.vmem [resolvable:$true] %s1957_s27 }
  0x67   : > { %930 = vmatprep.subr.bf16.mxu0 %v2977_v3  ;;  %2537 = vmatprep.subr.bf16.mxu1 %v2977_v3  ;;  %v2668_v6 = vld [vmem:[#allocation6 + $0x20] sm:$0xff]   ;;  %v2669_v7 = vld [vmem:[#allocation6 + $0x18] sm:$0xff]   ;;  %v2670_v9 = vld [vmem:[#allocation6 + $0x10] sm:$0xff]   ;;  %s3646_s9 = scalar_lea.hbm %s3816_s2, %s2345_s25  ;;  %s1943_s18 = scalar_lea.sflag [#allocation5], %s3122_s21 }
  0x68   : > { %931 = vmatpush1.bf16.msra.mxu0 %v2665_v2  ;;  %2553 = vmatpush1.bf16.msra.mxu1 %v2665_v2  ;;  %v2683_v8 = vld [vmem:[%s3126_s6 + $0x4] ss:$8 sps:$4 sm:$0xff]   ;;  %v2673_v13 = vld [vmem:[#allocation6 + $0x78] sm:$0xff]   ;;  %v2674_v14 = vld [vmem:[#allocation6 + $0x70] sm:$0xff]   ;;  %s2831_s10 = scalar_lea.vmem %s3648_s27, 4096  ;;  %p3835_p4 = scmp.ne.s32.totalorder %s3833_s13, 0 }
  0x69   : > { %932 = vmatprep.subr.bf16.mxu0 %v2977_v3  ;;  %2538 = vmatprep.subr.bf16.mxu1 %v2977_v3  ;;  %v2671_v10 = vld [vmem:[#allocation6 + $0x8] sm:$0xff]   ;;  %v2672_v11 = vld [vmem:[#allocation6] sm:$0xff]   ;;  %v2677_v17 = vld [vmem:[#allocation6 + $0x58] sm:$0xff]   ;;  %p2832_p1 = scmp.ne.s32.totalorder %s3648_s27, %s2831_s10  ;;  %s2978_s14 = smov [#allocation8]  }
  0x6a   : > { %962 = vmatprep.mubr.bf16.mxu0 %v2683_v8  ;;  %v2707_v12 = vld [vmem:[%s3126_s6 + $0x104] ss:$8 sps:$4 sm:$0xff]   ;;  %v2678_v18 = vld [vmem:[#allocation6 + $0x50] sm:$0xff]   ;;  %v2681_v21 = vld [vmem:[%s3126_s6] ss:$8 sps:$4 sm:$0xff]   ;;  %s2835_s11 = sshll.u32 %s2978_s14, 4  ;;  %s2836_s11 = int_to_ptr.vmem [resolvable:$false] %s2835_s11 }
  0x6b   : > { %1090 = vmatprep.mubr.bf16.mxu1 %v2707_v12  ;;  %v2675_v15 = vld [vmem:[#allocation6 + $0x68] sm:$0xff]   ;;  %v2676_v16 = vld [vmem:[#allocation6 + $0x60] sm:$0xff]   ;;  %v2684_v23 = vld [vmem:[%s3126_s6 + $0x14] ss:$8 sps:$4 sm:$0xff]   ;;  %p2833_p8 = pnand %p2832_p1, %p3835_p4  ;;  %s2837_s29 = scalar_lea.vmem %s2836_s11, 8192 }
  0x6c   : > { %933 = vmatpush1.bf16.msra.mxu0 %v2666_v4  ;;  %2554 = vmatpush1.bf16.msra.mxu1 %v2666_v4  ;;  %v2679_v19 = vld [vmem:[#allocation6 + $0x48] sm:$0xff]   ;;  %v2680_v20 = vld [vmem:[#allocation6 + $0x40] sm:$0xff]   ;;  %v2711_v24 = vld [vmem:[%s3126_s6 + $0x114] ss:$8 sps:$4 sm:$0xff]   ;;  %p2838_p13 = scmp.lt.s32.totalorder %s3648_s27, %s2836_s11  ;;  %p2839_p0 = scmp.lt.s32.totalorder %s2837_s29, %s2831_s10 }
  0x6d   : > { %934 = vmatprep.subr.bf16.mxu0 %v2977_v3  ;;  %2539 = vmatprep.subr.bf16.mxu1 %v2977_v3  ;;  %v2705_v22 = vld [vmem:[%s3126_s6 + $0x100] ss:$8 sps:$4 sm:$0xff]   ;;  %v2686_v25 = vld [vmem:[%s3126_s6 + $0x10] ss:$8 sps:$4 sm:$0xff]   ;;  %v2687_v27 = vld [vmem:[%s3126_s6 + $0x24] ss:$8 sps:$4 sm:$0xff]   ;;  %p2834_p12 = pneg %p2833_p8 }
  0x6e   : > { %v2713_v26 = vld [vmem:[%s3126_s6 + $0x110] ss:$8 sps:$4 sm:$0xff]   ;;  %v2717_v28 = vld [vmem:[%s3126_s6 + $0x124] ss:$8 sps:$4 sm:$0xff]   ;;  %v2689_v29 = vld [vmem:[%s3126_s6 + $0x20] ss:$8 sps:$4 sm:$0xff]   ;;  %p2840_p3 = por %p2839_p0, %p2838_p13 }
  0x6f   : > { %v2719_v30 = vld [vmem:[%s3126_s6 + $0x120] ss:$8 sps:$4 sm:$0xff]   ;;  %v2690_v31 = vld [vmem:[%s3126_s6 + $0x34] ss:$8 sps:$4 sm:$0xff]   ;;  %v2692_v33 = vld [vmem:[%s3126_s6 + $0x30] ss:$8 sps:$4 sm:$0xff]  }
  0x70   : > { %935 = vmatpush1.bf16.msra.mxu0 %v2667_v5  ;;  %2555 = vmatpush1.bf16.msra.mxu1 %v2667_v5  ;;  %v2723_v32 = vld [vmem:[%s3126_s6 + $0x134] ss:$8 sps:$4 sm:$0xff]   ;;  %v2725_v34 = vld [vmem:[%s3126_s6 + $0x130] ss:$8 sps:$4 sm:$0xff]   ;;  %v2693_v35 = vld [vmem:[%s3126_s6 + $0x44] ss:$8 sps:$4 sm:$0xff]   ;;  %p2841_p5 = pnand %p2840_p3, %p2834_p12 }
  0x71   : > { %936 = vmatprep.subr.bf16.mxu0 %v2977_v3  ;;  %2540 = vmatprep.subr.bf16.mxu1 %v2977_v3  ;;  %v2729_v36 = vld [vmem:[%s3126_s6 + $0x144] ss:$8 sps:$4 sm:$0xff]   ;;  %v2695_v37 = vld [vmem:[%s3126_s6 + $0x40] ss:$8 sps:$4 sm:$0xff]   ;;  %v2696_v39 = vld [vmem:[%s3126_s6 + $0x54] ss:$8 sps:$4 sm:$0xff]  }
  0x72   : > { %v2731_v38 = vld [vmem:[%s3126_s6 + $0x140] ss:$8 sps:$4 sm:$0xff]   ;;  %v2735_v40 = vld [vmem:[%s3126_s6 + $0x154] ss:$8 sps:$4 sm:$0xff]   ;;  %v2698_v41 = vld [vmem:[%s3126_s6 + $0x50] ss:$8 sps:$4 sm:$0xff]  }
  0x73   : > { %v2737_v42 = vld [vmem:[%s3126_s6 + $0x150] ss:$8 sps:$4 sm:$0xff]   ;;  %v2699_v43 = vld [vmem:[%s3126_s6 + $0x64] ss:$8 sps:$4 sm:$0xff]   ;;  %v2701_v45 = vld [vmem:[%s3126_s6 + $0x60] ss:$8 sps:$4 sm:$0xff]  }
  0x74   : > { %937 = vmatpush1.bf16.msra.mxu0 %v2668_v6  ;;  %2556 = vmatpush1.bf16.msra.mxu1 %v2668_v6  ;;  %v2741_v44 = vld [vmem:[%s3126_s6 + $0x164] ss:$8 sps:$4 sm:$0xff]   ;;  %v2743_v46 = vld [vmem:[%s3126_s6 + $0x160] ss:$8 sps:$4 sm:$0xff]   ;;  %v2702_v47 = vld [vmem:[%s3126_s6 + $0x74] ss:$8 sps:$4 sm:$0xff]  }
  0x75   : > { %938 = vmatprep.subr.bf16.mxu0 %v2977_v3  ;;  %2541 = vmatprep.subr.bf16.mxu1 %v2977_v3  ;;  %v2747_v48 = vld [vmem:[%s3126_s6 + $0x174] ss:$8 sps:$4 sm:$0xff]   ;;  %v2704_v49 = vld [vmem:[%s3126_s6 + $0x70] ss:$8 sps:$4 sm:$0xff]   ;;  %v2708_v51 = vld [vmem:[%s3126_s6 + $0x84] ss:$8 sps:$4 sm:$0xff]  }
  0x76   : > { %v2749_v50 = vld [vmem:[%s3126_s6 + $0x170] ss:$8 sps:$4 sm:$0xff]   ;;  %v2753_v52 = vld [vmem:[%s3126_s6 + $0x184] ss:$8 sps:$4 sm:$0xff]   ;;  %v2710_v53 = vld [vmem:[%s3126_s6 + $0x80] ss:$8 sps:$4 sm:$0xff]  }
  0x77   : > { %v2755_v54 = vld [vmem:[%s3126_s6 + $0x180] ss:$8 sps:$4 sm:$0xff]   ;;  %v2714_v55 = vld [vmem:[%s3126_s6 + $0x94] ss:$8 sps:$4 sm:$0xff]   ;;  %v2716_v57 = vld [vmem:[%s3126_s6 + $0x90] ss:$8 sps:$4 sm:$0xff]  }
  0x78   : > { %939 = vmatpush1.bf16.msra.mxu0 %v2669_v7  ;;  %2557 = vmatpush1.bf16.msra.mxu1 %v2669_v7  ;;  %v2756_v56 = vld [vmem:[%s3126_s6 + $0x194] ss:$8 sps:$4 sm:$0xff]   ;;  %v2758_v58 = vld [vmem:[%s3126_s6 + $0x190] ss:$8 sps:$4 sm:$0xff]   ;;  %v2720_v59 = vld [vmem:[%s3126_s6 + $0xa4] ss:$8 sps:$4 sm:$0xff]  }
  0x79   : > { %940 = vmatprep.subr.bf16.mxu0 %v2977_v3  ;;  %2542 = vmatprep.subr.bf16.mxu1 %v2977_v3  ;;  %v2759_v60 = vld [vmem:[%s3126_s6 + $0x1a4] ss:$8 sps:$4 sm:$0xff]   ;;  %v2722_v61 = vld [vmem:[%s3126_s6 + $0xa0] ss:$8 sps:$4 sm:$0xff]   ;;  %v2726_v63 = vld [vmem:[%s3126_s6 + $0xb4] ss:$8 sps:$4 sm:$0xff]  }
  0x7a   : > { %v2761_v62 = vld [vmem:[%s3126_s6 + $0x1a0] ss:$8 sps:$4 sm:$0xff]   ;;  %v2762_v0 = vld [vmem:[%s3126_s6 + $0x1b4] ss:$8 sps:$4 sm:$0xff]   ;;  %v2728_v1 = vld [vmem:[%s3126_s6 + $0xb0] ss:$8 sps:$4 sm:$0xff]  }
  0x7b   : > { %v2764_v2 = vld [vmem:[%s3126_s6 + $0x1b0] ss:$8 sps:$4 sm:$0xff]   ;;  %v2765_v4 = vld [vmem:[%s3126_s6 + $0x1c4] ss:$8 sps:$4 sm:$0xff]   ;;  %v2734_v5 = vld [vmem:[%s3126_s6 + $0xc0] ss:$8 sps:$4 sm:$0xff]  }
  0x7c   : > { %941 = vmatpush1.bf16.msra.mxu0 %v2670_v9  ;;  %2558 = vmatpush1.bf16.msra.mxu1 %v2670_v9  ;;  %v2767_v6 = vld [vmem:[%s3126_s6 + $0x1c0] ss:$8 sps:$4 sm:$0xff]   ;;  %v2738_v7 = vld [vmem:[%s3126_s6 + $0xd4] ss:$8 sps:$4 sm:$0xff]   ;;  %v2740_v9 = vld [vmem:[%s3126_s6 + $0xd0] ss:$8 sps:$4 sm:$0xff]  }
  0x7d   : > { %942 = vmatprep.subr.bf16.mxu0 %v2977_v3  ;;  %2543 = vmatprep.subr.bf16.mxu1 %v2977_v3  ;;  %v2768_v8 = vld [vmem:[%s3126_s6 + $0x1d4] ss:$8 sps:$4 sm:$0xff]   ;;  %v2771_v12 = vld [vmem:[%s3126_s6 + $0x1e4] ss:$8 sps:$4 sm:$0xff]  }
  0x80   : > { %943 = vmatpush1.bf16.msra.mxu0 %v2671_v10  ;;  %2559 = vmatpush1.bf16.msra.mxu1 %v2671_v10  ;;  %v2770_v10 = vld [vmem:[%s3126_s6 + $0x1d0] ss:$8 sps:$4 sm:$0xff]  }
  0x81   : > { %944 = vmatprep.subr.bf16.mxu0 %v2977_v3  ;;  %2544 = vmatprep.subr.bf16.mxu1 %v2977_v3 }
  0x84   : > { %945 = vmatpush1.bf16.msra.mxu0 %v2672_v11  ;;  %2560 = vmatpush1.bf16.msra.mxu1 %v2672_v11  ;;  %v2744_v11 = vld [vmem:[%s3126_s6 + $0xe4] ss:$8 sps:$4 sm:$0xff]  }
  0x85   : > { %946 = vmatprep.subr.bf16.mxu0 %v2977_v3  ;;  %2545 = vmatprep.subr.bf16.mxu1 %v2977_v3 }
  0x88   : > { %947 = vmatpush2.bf16.msra.mxu0 %v2673_v13  ;;  %2561 = vmatpush2.bf16.msra.mxu1 %v2673_v13  ;;  %v2746_v13 = vld [vmem:[%s3126_s6 + $0xe0] ss:$8 sps:$4 sm:$0xff]  }
  0x89   : > { %948 = vmatprep.subr.bf16.mxu0 %v2977_v3  ;;  %2546 = vmatprep.subr.bf16.mxu1 %v2977_v3 }
  0x8c   : > { %949 = vmatpush2.bf16.msra.mxu0 %v2674_v14  ;;  %2562 = vmatpush2.bf16.msra.mxu1 %v2674_v14  ;;  %v2773_v14 = vld [vmem:[%s3126_s6 + $0x1e0] ss:$8 sps:$4 sm:$0xff]  }
  0x8d   : > { %950 = vmatprep.subr.bf16.mxu0 %v2977_v3  ;;  %2547 = vmatprep.subr.bf16.mxu1 %v2977_v3 }
  0x90   : > { %951 = vmatpush2.bf16.msra.mxu0 %v2675_v15  ;;  %2563 = vmatpush2.bf16.msra.mxu1 %v2675_v15  ;;  %v2750_v15 = vld [vmem:[%s3126_s6 + $0xf4] ss:$8 sps:$4 sm:$0xff]  }
  0x91   : > { %952 = vmatprep.subr.bf16.mxu0 %v2977_v3  ;;  %2548 = vmatprep.subr.bf16.mxu1 %v2977_v3 }
  0x94   : > { %953 = vmatpush2.bf16.msra.mxu0 %v2676_v16  ;;  %2564 = vmatpush2.bf16.msra.mxu1 %v2676_v16  ;;  %v2774_v16 = vld [vmem:[%s3126_s6 + $0x1f4] ss:$8 sps:$4 sm:$0xff]  }
  0x95   : > { %954 = vmatprep.subr.bf16.mxu0 %v2977_v3  ;;  %2549 = vmatprep.subr.bf16.mxu1 %v2977_v3 }
  0x98   : > { %955 = vmatpush2.bf16.msra.mxu0 %v2677_v17  ;;  %2565 = vmatpush2.bf16.msra.mxu1 %v2677_v17  ;;  %v2752_v17 = vld [vmem:[%s3126_s6 + $0xf0] ss:$8 sps:$4 sm:$0xff]  }
  0x99   : > { %956 = vmatprep.subr.bf16.mxu0 %v2977_v3  ;;  %2550 = vmatprep.subr.bf16.mxu1 %v2977_v3 }
  0x9c   : > { %957 = vmatpush2.bf16.msra.mxu0 %v2678_v18  ;;  %2566 = vmatpush2.bf16.msra.mxu1 %v2678_v18  ;;  %v2776_v18 = vld [vmem:[%s3126_s6 + $0x1f0] ss:$8 sps:$4 sm:$0xff]  }
  0x9d   : > { %958 = vmatprep.subr.bf16.mxu0 %v2977_v3  ;;  %2551 = vmatprep.subr.bf16.mxu1 %v2977_v3 }
  0xa0   : > { %959 = vmatpush2.bf16.msra.mxu0 %v2679_v19  ;;  %2567 = vmatpush2.bf16.msra.mxu1 %v2679_v19  ;;  %v354_v19 = vld [vmem:[#allocation2 + $0xb0] sm:$0xff] }
  0xa1   : > { %960 = vmatprep.subr.bf16.mxu0 %v2977_v3  ;;  %2552 = vmatprep.subr.bf16.mxu1 %v2977_v3  ;;  %v2732_v3 = vld [vmem:[%s3126_s6 + $0xc4] ss:$8 sps:$4 sm:$0xff]  }
  0xa4   : > { %961 = vmatpush2.bf16.msra.mxu0 %v2680_v20  ;;  %2568 = vmatpush2.bf16.msra.mxu1 %v2680_v20  ;;  %v386_v20 = vld [vmem:[#allocation2 + $0x148] sm:$0xff] }
  0xa7   : > { %963 = vmatmul.mubr.bf16.vlgmr.msra.gmra.mxu0 %v2681_v21  ;;  %1091 = vmatmul.mubr.bf16.vlgmr.msra.gmra.mxu1 %v2705_v22 }
  0xa8   : > { %970 = vmatprep.mubr.bf16.mxu0 %v2684_v23  ;;  %1098 = vmatprep.mubr.bf16.mxu1 %v2711_v24 }
  0xaf   : > { %971 = vmatmul.mubr.bf16.gmra.mxu0 %v2686_v25  ;;  %1099 = vmatmul.mubr.bf16.gmra.mxu1 %v2713_v26  ;;  %v355_v26 = vld [vmem:[#allocation2 + $0x1b0] sm:$0xff] }
  0xb0   : > { %978 = vmatprep.mubr.bf16.mxu0 %v2687_v27  ;;  %1106 = vmatprep.mubr.bf16.mxu1 %v2717_v28  ;;  %v387_v28 = vld [vmem:[#allocation2 + $0x1d0] sm:$0xff] }
  0xb7   : > { %979 = vmatmul.mubr.bf16.gmra.mxu0 %v2689_v29  ;;  %1107 = vmatmul.mubr.bf16.gmra.mxu1 %v2719_v30 }
  0xb8   : > { %986 = vmatprep.mubr.bf16.mxu0 %v2690_v31  ;;  %1114 = vmatprep.mubr.bf16.mxu1 %v2723_v32 }
  0xbf   : > { %987 = vmatmul.mubr.bf16.gmra.mxu0 %v2692_v33  ;;  %1115 = vmatmul.mubr.bf16.gmra.mxu1 %v2725_v34  ;;  %v356_v34 = vld [vmem:[#allocation2 + $0xd8] sm:$0xff] }
  0xc0   : > { %994 = vmatprep.mubr.bf16.mxu0 %v2693_v35  ;;  %1122 = vmatprep.mubr.bf16.mxu1 %v2729_v36  ;;  %v388_v36 = vld [vmem:[#allocation2 + $0x100] sm:$0xff] }
  0xc7   : > { %995 = vmatmul.mubr.bf16.gmra.mxu0 %v2695_v37  ;;  %1123 = vmatmul.mubr.bf16.gmra.mxu1 %v2731_v38 }
  0xc8   : > { %1002 = vmatprep.mubr.bf16.mxu0 %v2696_v39  ;;  %1130 = vmatprep.mubr.bf16.mxu1 %v2735_v40 }
  0xcf   : > { %1003 = vmatmul.mubr.bf16.gmra.mxu0 %v2698_v41  ;;  %1131 = vmatmul.mubr.bf16.gmra.mxu1 %v2737_v42 }
  0xd0   : > { %1010 = vmatprep.mubr.bf16.mxu0 %v2699_v43  ;;  %1138 = vmatprep.mubr.bf16.mxu1 %v2741_v44  ;;  %v357_v44 = vld [vmem:[#allocation2 + $0x18] sm:$0xff] }
  0xd7   : > { %1011 = vmatmul.mubr.bf16.gmra.mxu0 %v2701_v45  ;;  %1139 = vmatmul.mubr.bf16.gmra.mxu1 %v2743_v46  ;;  %v389_v46 = vld [vmem:[#allocation2 + $0xc8] sm:$0xff] }
  0xd8   : > { %1018 = vmatprep.mubr.bf16.mxu0 %v2702_v47  ;;  %1146 = vmatprep.mubr.bf16.mxu1 %v2747_v48 }
  0xdf   : > { %1019 = vmatmul.mubr.bf16.gmra.mxu0 %v2704_v49  ;;  %1147 = vmatmul.mubr.bf16.gmra.mxu1 %v2749_v50 }
  0xe0   : > { %1026 = vmatprep.mubr.bf16.mxu0 %v2708_v51  ;;  %1154 = vmatprep.mubr.bf16.mxu1 %v2753_v52  ;;  %v358_v52 = vld [vmem:[#allocation2 + $0x50] sm:$0xff] }
  0xe7   : > { %1027 = vmatmul.mubr.bf16.gmra.mxu0 %v2710_v53  ;;  %1155 = vmatmul.mubr.bf16.gmra.mxu1 %v2755_v54  ;;  %v390_v54 = vld [vmem:[#allocation2 + $0x40] sm:$0xff] }
  0xe8   : > { %1034 = vmatprep.mubr.bf16.mxu0 %v2714_v55  ;;  %1162 = vmatprep.mubr.bf16.mxu1 %v2756_v56 }
  0xef   : > { %1035 = vmatmul.mubr.bf16.gmra.mxu0 %v2716_v57  ;;  %1163 = vmatmul.mubr.bf16.gmra.mxu1 %v2758_v58 }
  0xf0   : > { %1042 = vmatprep.mubr.bf16.mxu0 %v2720_v59  ;;  %1170 = vmatprep.mubr.bf16.mxu1 %v2759_v60 }
  0xf7   : > { %1043 = vmatmul.mubr.bf16.gmra.mxu0 %v2722_v61  ;;  %1171 = vmatmul.mubr.bf16.gmra.mxu1 %v2761_v62  ;;  %v359_v62 = vld [vmem:[#allocation2 + $0x168] sm:$0xff] }
  0xf8   : > { %1050 = vmatprep.mubr.bf16.mxu0 %v2726_v63  ;;  %1178 = vmatprep.mubr.bf16.mxu1 %v2762_v0  ;;  %v391_v0 = vld [vmem:[#allocation2 + $0x1f8] sm:$0xff] }
  0xff   : > { %1051 = vmatmul.mubr.bf16.gmra.mxu0 %v2728_v1  ;;  %1179 = vmatmul.mubr.bf16.gmra.mxu1 %v2764_v2 }
 0x100   : > { %1058 = vmatprep.mubr.bf16.mxu0 %v2732_v3  ;;  %1186 = vmatprep.mubr.bf16.mxu1 %v2765_v4 }
 0x107   : > { %1059 = vmatmul.mubr.bf16.gmra.mxu0 %v2734_v5  ;;  %1187 = vmatmul.mubr.bf16.gmra.mxu1 %v2767_v6  ;;  %v360_v6 = vld [vmem:[#allocation2 + $0x130] sm:$0xff] }
 0x108   : > { %1066 = vmatprep.mubr.bf16.mxu0 %v2738_v7  ;;  %1194 = vmatprep.mubr.bf16.mxu1 %v2768_v8  ;;  %v392_v8 = vld [vmem:[#allocation2 + $0x20] sm:$0xff] }
 0x10f   : > { %1067 = vmatmul.mubr.bf16.gmra.mxu0 %v2740_v9  ;;  %1195 = vmatmul.mubr.bf16.gmra.mxu1 %v2770_v10 }
 0x110   : > { %1074 = vmatprep.mubr.bf16.mxu0 %v2744_v11  ;;  %1202 = vmatprep.mubr.bf16.mxu1 %v2771_v12 }
 0x117   : > { %1075 = vmatmul.mubr.bf16.gmra.mxu0 %v2746_v13  ;;  %1203 = vmatmul.mubr.bf16.gmra.mxu1 %v2773_v14 }
 0x118   : > { %1082 = vmatprep.mubr.bf16.mxu0 %v2750_v15  ;;  %1210 = vmatprep.mubr.bf16.mxu1 %v2774_v16  ;;  %v361_v16 = vld [vmem:[#allocation2 + $0x48] sm:$0xff] }
 0x11f   : > { %1083 = vmatmul.mubr.bf16.gmra.mxu0 %v2752_v17  ;;  %1211 = vmatmul.mubr.bf16.gmra.mxu1 %v2776_v18  ;;  %v393_v18 = vld [vmem:[#allocation2 + $0x128] sm:$0xff] }
 0x167   : > { %v964_v21 = vpop.f32.mrf.mxu0  ;;  %v1092_v22 = vpop.f32.mrf.mxu1 }
 0x168   : > { %v3304_v23 = vadd.f32 %v964_v21, %v354_v19  ;;  %v3306_v24 = vadd.f32 %v1092_v22, %v386_v20 }
 0x169   : > { %v966_v25 = vpop.f32.mrf.mxu0  ;;  %v1094_v27 = vpop.f32.mrf.mxu1 }
 0x16a   : > { %1283 = vst [vmem:[#allocation2 + $0xb0] sm:$0xff] %v3304_v23  ;;  %1315 = vst [vmem:[#allocation2 + $0x148] sm:$0xff] %v3306_v24 }
 0x16b   : > { %v967_v29 = vpop.f32.mrf.mxu0  ;;  %v1095_v30 = vpop.f32.mrf.mxu1 }
 0x16c   : > { %v3310_v31 = vadd.f32 %v967_v29, %v355_v26  ;;  %v3312_v32 = vadd.f32 %v1095_v30, %v387_v28  ;;  %v362_v26 = vld [vmem:[#allocation2 + $0x180] sm:$0xff] }
 0x16d   : > { %v969_v33 = vpop.f32.mrf.mxu0  ;;  %v1097_v35 = vpop.f32.mrf.mxu1  ;;  %v394_v28 = vld [vmem:[#allocation2 + $0x1a0] sm:$0xff] }
 0x16e   : > { %1284 = vst [vmem:[#allocation2 + $0x1b0] sm:$0xff] %v3310_v31  ;;  %v2349_v37 = vpack.c.bf16 %v3310_v31, %v3304_v23  ;;  %1316 = vst [vmem:[#allocation2 + $0x1d0] sm:$0xff] %v3312_v32  ;;  %v2429_v38 = vpack.c.bf16 %v3312_v32, %v3306_v24 }
 0x16f   : > { %v972_v39 = vpop.f32.mrf.mxu0  ;;  %v1100_v40 = vpop.f32.mrf.mxu1 }
 0x170   : > { %2350 = vst [vmem:[%s3204_s23] sm:$0xff] %v2349_v37   ;;  %v3321_v41 = vadd.f32 %v972_v39, %v356_v34  ;;  %2521 = vst [vmem:[%s3204_s23 + $0x80] sm:$0xff] %v2429_v38   ;;  %v3324_v42 = vadd.f32 %v1100_v40, %v388_v36  ;;  %v363_v38 = vld [vmem:[#allocation2 + $0x110] sm:$0xff] }
 0x171   : > { %v974_v43 = vpop.f32.mrf.mxu0  ;;  %v1102_v45 = vpop.f32.mrf.mxu1  ;;  %v395_v40 = vld [vmem:[#allocation2 + $0x1f0] sm:$0xff] }
 0x172   : > { %1285 = vst [vmem:[#allocation2 + $0xd8] sm:$0xff] %v3321_v41  ;;  %1317 = vst [vmem:[#allocation2 + $0x100] sm:$0xff] %v3324_v42 }
 0x173   : > { %v975_v47 = vpop.f32.mrf.mxu0  ;;  %v1103_v48 = vpop.f32.mrf.mxu1 }
 0x174   : > { %v3328_v49 = vadd.f32 %v975_v47, %v357_v44  ;;  %v3330_v50 = vadd.f32 %v1103_v48, %v389_v46  ;;  %v364_v48 = vld [vmem:[#allocation2 + $0x118] sm:$0xff] }
 0x175   : > { %v977_v51 = vpop.f32.mrf.mxu0  ;;  %v1105_v53 = vpop.f32.mrf.mxu1 }
 0x176   : > { %1286 = vst [vmem:[#allocation2 + $0x18] sm:$0xff] %v3328_v49  ;;  %v2354_v55 = vpack.c.bf16 %v3328_v49, %v3321_v41  ;;  %1318 = vst [vmem:[#allocation2 + $0xc8] sm:$0xff] %v3330_v50  ;;  %v2434_v56 = vpack.c.bf16 %v3330_v50, %v3324_v42 }
 0x177   : > { %v980_v57 = vpop.f32.mrf.mxu0  ;;  %v1108_v58 = vpop.f32.mrf.mxu1 }
 0x178   : > { %2506 = vst [vmem:[%s3204_s23 + $0x8] sm:$0xff] %v2354_v55   ;;  %v3339_v59 = vadd.f32 %v980_v57, %v358_v52  ;;  %2522 = vst [vmem:[%s3204_s23 + $0x88] sm:$0xff] %v2434_v56   ;;  %v3342_v60 = vadd.f32 %v1108_v58, %v390_v54  ;;  %v396_v52 = vld [vmem:[#allocation2 + $0xe8] sm:$0xff] }
 0x179   : > { %v982_v61 = vpop.f32.mrf.mxu0  ;;  %v1110_v63 = vpop.f32.mrf.mxu1 }
 0x17a   : > { %1287 = vst [vmem:[#allocation2 + $0x50] sm:$0xff] %v3339_v59  ;;  %1319 = vst [vmem:[#allocation2 + $0x40] sm:$0xff] %v3342_v60 }
 0x17b   : > { %v983_v1 = vpop.f32.mrf.mxu0  ;;  %v1111_v2 = vpop.f32.mrf.mxu1 }
 0x17c   : > { %v3346_v3 = vadd.f32 %v983_v1, %v359_v62  ;;  %v3348_v4 = vadd.f32 %v1111_v2, %v391_v0  ;;  %v365_v62 = vld [vmem:[#allocation2 + $0x98] sm:$0xff] }
 0x17d   : > { %v985_v5 = vpop.f32.mrf.mxu0  ;;  %v1113_v7 = vpop.f32.mrf.mxu1  ;;  %v397_v0 = vld [vmem:[#allocation2 + $0x78] sm:$0xff] }
 0x17e   : > { %1288 = vst [vmem:[#allocation2 + $0x168] sm:$0xff] %v3346_v3  ;;  %v2359_v9 = vpack.c.bf16 %v3346_v3, %v3339_v59  ;;  %1320 = vst [vmem:[#allocation2 + $0x1f8] sm:$0xff] %v3348_v4  ;;  %v2439_v10 = vpack.c.bf16 %v3348_v4, %v3342_v60 }
 0x17f   : > { %v988_v11 = vpop.f32.mrf.mxu0  ;;  %v1116_v12 = vpop.f32.mrf.mxu1 }
 0x180   : > { %2507 = vst [vmem:[%s3204_s23 + $0x10] sm:$0xff] %v2359_v9   ;;  %v3357_v13 = vadd.f32 %v988_v11, %v360_v6  ;;  %2523 = vst [vmem:[%s3204_s23 + $0x90] sm:$0xff] %v2439_v10   ;;  %v3360_v14 = vadd.f32 %v1116_v12, %v392_v8  ;;  %v366_v8 = vld [vmem:[#allocation2 + $0x120] sm:$0xff]  ;;  %v398_v10 = vld [vmem:[#allocation2 + $0x70] sm:$0xff] }
 0x181   : > { %v990_v15 = vpop.f32.mrf.mxu0  ;;  %v1118_v17 = vpop.f32.mrf.mxu1 }
 0x182   : > { %1289 = vst [vmem:[#allocation2 + $0x130] sm:$0xff] %v3357_v13  ;;  %1321 = vst [vmem:[#allocation2 + $0x20] sm:$0xff] %v3360_v14 }
 0x183   : > { %v991_v19 = vpop.f32.mrf.mxu0  ;;  %v1119_v20 = vpop.f32.mrf.mxu1 }
 0x184   : > { %v3364_v21 = vadd.f32 %v991_v19, %v361_v16  ;;  %v3366_v22 = vadd.f32 %v1119_v20, %v393_v18  ;;  %v367_v20 = vld [vmem:[#allocation2 + $0x150] sm:$0xff] }
 0x185   : > { %v993_v25 = vpop.f32.mrf.mxu0  ;;  %v1121_v27 = vpop.f32.mrf.mxu1 }
 0x186   : > { %1290 = vst [vmem:[#allocation2 + $0x48] sm:$0xff] %v3364_v21  ;;  %v2364_v29 = vpack.c.bf16 %v3364_v21, %v3357_v13  ;;  %1322 = vst [vmem:[#allocation2 + $0x128] sm:$0xff] %v3366_v22  ;;  %v2444_v30 = vpack.c.bf16 %v3366_v22, %v3360_v14 }
 0x187   : > { %v996_v33 = vpop.f32.mrf.mxu0  ;;  %v1124_v34 = vpop.f32.mrf.mxu1 }
 0x188   : > { %2508 = vst [vmem:[%s3204_s23 + $0x18] sm:$0xff] %v2364_v29   ;;  %v3375_v35 = vadd.f32 %v996_v33, %v362_v26  ;;  %2524 = vst [vmem:[%s3204_s23 + $0x98] sm:$0xff] %v2444_v30   ;;  %v3378_v36 = vadd.f32 %v1124_v34, %v394_v28  ;;  %v399_v26 = vld [vmem:[#allocation2 + $0x90] sm:$0xff]  ;;  %v368_v34 = vld [vmem:[#allocation2 + $0x108] sm:$0xff] }
 0x189   : > { %v998_v37 = vpop.f32.mrf.mxu0  ;;  %v1126_v39 = vpop.f32.mrf.mxu1 }
 0x18a   : > { %1291 = vst [vmem:[#allocation2 + $0x180] sm:$0xff] %v3375_v35  ;;  %1323 = vst [vmem:[#allocation2 + $0x1a0] sm:$0xff] %v3378_v36 }
 0x18b   : > { %v999_v43 = vpop.f32.mrf.mxu0  ;;  %v1127_v44 = vpop.f32.mrf.mxu1 }
 0x18c   : > { %v3382_v45 = vadd.f32 %v999_v43, %v363_v38  ;;  %v3384_v46 = vadd.f32 %v1127_v44, %v395_v40  ;;  %v400_v38 = vld [vmem:[#allocation2 + $0x1d8] sm:$0xff] }
 0x18d   : > { %v1001_v47 = vpop.f32.mrf.mxu0  ;;  %v1129_v51 = vpop.f32.mrf.mxu1 }
 0x18e   : > { %1292 = vst [vmem:[#allocation2 + $0x110] sm:$0xff] %v3382_v45  ;;  %v2369_v53 = vpack.c.bf16 %v3382_v45, %v3375_v35  ;;  %1324 = vst [vmem:[#allocation2 + $0x1f0] sm:$0xff] %v3384_v46  ;;  %v2449_v54 = vpack.c.bf16 %v3384_v46, %v3378_v36 }
 0x18f   : > { %v1004_v55 = vpop.f32.mrf.mxu0  ;;  %v1132_v56 = vpop.f32.mrf.mxu1 }
 0x190   : > { %2509 = vst [vmem:[%s3204_s23 + $0x20] sm:$0xff] %v2369_v53   ;;  %v3393_v57 = vadd.f32 %v1004_v55, %v364_v48  ;;  %2525 = vst [vmem:[%s3204_s23 + $0xa0] sm:$0xff] %v2449_v54   ;;  %v3396_v58 = vadd.f32 %v1132_v56, %v396_v52  ;;  %v369_v52 = vld [vmem:[#allocation2 + $0x60] sm:$0xff]  ;;  %v401_v54 = vld [vmem:[#allocation2 + $0xd0] sm:$0xff] }
 0x191   : > { %v1006_v61 = vpop.f32.mrf.mxu0  ;;  %v1134_v63 = vpop.f32.mrf.mxu1 }
 0x192   : > { %1293 = vst [vmem:[#allocation2 + $0x118] sm:$0xff] %v3393_v57  ;;  %1325 = vst [vmem:[#allocation2 + $0xe8] sm:$0xff] %v3396_v58 }
 0x193   : > { %v1007_v1 = vpop.f32.mrf.mxu0  ;;  %v1135_v2 = vpop.f32.mrf.mxu1 }
 0x194   : > { %v3400_v5 = vadd.f32 %v1007_v1, %v365_v62  ;;  %v3402_v6 = vadd.f32 %v1135_v2, %v397_v0  ;;  %v370_v0 = vld [vmem:[#allocation2 + $0xe0] sm:$0xff]  ;;  %v402_v2 = vld [vmem:[#allocation2 + $0xb8] sm:$0xff] }
 0x195   : > { %v1009_v7 = vpop.f32.mrf.mxu0  ;;  %v1137_v9 = vpop.f32.mrf.mxu1 }
 0x196   : > { %1294 = vst [vmem:[#allocation2 + $0x98] sm:$0xff] %v3400_v5  ;;  %v2374_v11 = vpack.c.bf16 %v3400_v5, %v3393_v57  ;;  %1326 = vst [vmem:[#allocation2 + $0x78] sm:$0xff] %v3402_v6  ;;  %v2454_v12 = vpack.c.bf16 %v3402_v6, %v3396_v58  ;;  %v1808_v9 = vmul.f32 %v3310_v31, %v3310_v31 }
 0x197   : > { %v1012_v15 = vpop.f32.mrf.mxu0  ;;  %v1140_v16 = vpop.f32.mrf.mxu1 }
 0x198   : > { %2510 = vst [vmem:[%s3204_s23 + $0x28] sm:$0xff] %v2374_v11   ;;  %v3411_v17 = vadd.f32 %v1012_v15, %v366_v8  ;;  %2526 = vst [vmem:[%s3204_s23 + $0xa8] sm:$0xff] %v2454_v12   ;;  %v3414_v18 = vadd.f32 %v1140_v16, %v398_v10  ;;  %v1807_v16 = vmul.f32 %v3304_v23, %v3304_v23 }
 0x199   : > { %v1014_v19 = vpop.f32.mrf.mxu0  ;;  %v1142_v25 = vpop.f32.mrf.mxu1 }
 0x19a   : > { %1295 = vst [vmem:[#allocation2 + $0x120] sm:$0xff] %v3411_v17  ;;  %1327 = vst [vmem:[#allocation2 + $0x70] sm:$0xff] %v3414_v18  ;;  %v1809_v19 = vmul.f32 %v3321_v41, %v3321_v41  ;;  %v371_v25 = vld [vmem:[#allocation2 + $0x188] sm:$0xff] }
 0x19b   : > { %v1015_v27 = vpop.f32.mrf.mxu0  ;;  %v1143_v28 = vpop.f32.mrf.mxu1 }
 0x19c   : > { %v3418_v29 = vadd.f32 %v1015_v27, %v367_v20  ;;  %v3420_v30 = vadd.f32 %v1143_v28, %v399_v26  ;;  %v403_v27 = vld [vmem:[#allocation2 + $0x88] sm:$0xff]  ;;  %v1735_v28 = vadd.f32 %v3310_v31, %v3304_v23  ;;  %v1811_v23 = vmul.f32 %v3339_v59, %v3339_v59 }
 0x19d   : > { %v1017_v33 = vpop.f32.mrf.mxu0  ;;  %v1145_v37 = vpop.f32.mrf.mxu1 }
 0x19e   : > { %1296 = vst [vmem:[#allocation2 + $0x150] sm:$0xff] %v3418_v29  ;;  %v2379_v39 = vpack.c.bf16 %v3418_v29, %v3411_v17  ;;  %1328 = vst [vmem:[#allocation2 + $0x90] sm:$0xff] %v3420_v30  ;;  %v2459_v40 = vpack.c.bf16 %v3420_v30, %v3414_v18  ;;  %v1871_v33 = vadd.f32 %v1808_v9, %v1807_v16 }
 0x19f   : > { %v1020_v43 = vpop.f32.mrf.mxu0  ;;  %v1148_v44 = vpop.f32.mrf.mxu1  ;;  %v1813_v9 = vmul.f32 %v3357_v13, %v3357_v13 }
 0x1a0   : > { %2511 = vst [vmem:[%s3204_s23 + $0x30] sm:$0xff] %v2379_v39   ;;  %v3429_v47 = vadd.f32 %v1020_v43, %v368_v34  ;;  %2527 = vst [vmem:[%s3204_s23 + $0xb0] sm:$0xff] %v2459_v40   ;;  %v3432_v48 = vadd.f32 %v1148_v44, %v400_v38  ;;  %v1810_v34 = vmul.f32 %v3328_v49, %v3328_v49 }
 0x1a1   : > { %v1022_v51 = vpop.f32.mrf.mxu0  ;;  %v1150_v53 = vpop.f32.mrf.mxu1  ;;  %v1736_v39 = vadd.f32 %v1735_v28, %v3321_v41  ;;  %v1872_v44 = vadd.f32 %v1871_v33, %v1809_v19  ;;  %v405_v19 = vld [vmem:[#allocation2 + $0x1c8] sm:$0xff] }
 0x1a2   : > { %1297 = vst [vmem:[#allocation2 + $0x108] sm:$0xff] %v3429_v47  ;;  %1329 = vst [vmem:[#allocation2 + $0x1d8] sm:$0xff] %v3432_v48  ;;  %v372_v51 = vld [vmem:[#allocation2 + $0x138] sm:$0xff]  ;;  %v404_v53 = vld [vmem:[#allocation2 + $0xa8] sm:$0xff] }
 0x1a3   : > { %v1023_v55 = vpop.f32.mrf.mxu0  ;;  %v1151_v56 = vpop.f32.mrf.mxu1 }
 0x1a4   : > { %v3436_v61 = vadd.f32 %v1023_v55, %v369_v52  ;;  %v3438_v62 = vadd.f32 %v1151_v56, %v401_v54  ;;  %v1737_v54 = vadd.f32 %v1736_v39, %v3328_v49  ;;  %v1873_v56 = vadd.f32 %v1872_v44, %v1810_v34  ;;  %v374_v39 = vld [vmem:[#allocation2 + $0x80] sm:$0xff] }
 0x1a5   : > { %v1025_v63 = vpop.f32.mrf.mxu0  ;;  %v1153_v1 = vpop.f32.mrf.mxu1 }
 0x1a6   : > { %1298 = vst [vmem:[#allocation2 + $0x60] sm:$0xff] %v3436_v61  ;;  %v2384_v7 = vpack.c.bf16 %v3436_v61, %v3429_v47  ;;  %1330 = vst [vmem:[#allocation2 + $0xd0] sm:$0xff] %v3438_v62  ;;  %v2464_v8 = vpack.c.bf16 %v3438_v62, %v3432_v48  ;;  %v1812_v63 = vmul.f32 %v3346_v3, %v3346_v3 }
 0x1a7   : > { %v1028_v10 = vpop.f32.mrf.mxu0  ;;  %v1156_v11 = vpop.f32.mrf.mxu1 }
 0x1a8   : > { %2512 = vst [vmem:[%s3204_s23 + $0x38] sm:$0xff] %v2384_v7   ;;  %v3449_v12 = vadd.f32 %v1028_v10, %v370_v0  ;;  %2528 = vst [vmem:[%s3204_s23 + $0xb8] sm:$0xff] %v2464_v8   ;;  %v3452_v15 = vadd.f32 %v1156_v11, %v402_v2  ;;  %v1738_v2 = vadd.f32 %v1737_v54, %v3339_v59  ;;  %v373_v11 = vld [vmem:[#allocation2 + $0x140] sm:$0xff] }
 0x1a9   : > { %v1030_v20 = vpop.f32.mrf.mxu0  ;;  %v1158_v26 = vpop.f32.mrf.mxu1  ;;  %v1874_v8 = vadd.f32 %v1873_v56, %v1811_v23  ;;  %v406_v23 = vld [vmem:[#allocation2 + $0x170] sm:$0xff] }
 0x1aa   : > { %1299 = vst [vmem:[#allocation2 + $0xe0] sm:$0xff] %v3449_v12  ;;  %1331 = vst [vmem:[#allocation2 + $0xb8] sm:$0xff] %v3452_v15  ;;  %v1739_v20 = vadd.f32 %v1738_v2, %v3346_v3  ;;  %v1815_v3 = vmul.f32 %v3375_v35, %v3375_v35  ;;  %v375_v2 = vld [vmem:[#allocation2 + $0x1a8] sm:$0xff] }
 0x1ab   : > { %v1031_v37 = vpop.f32.mrf.mxu0  ;;  %v1159_v38 = vpop.f32.mrf.mxu1  ;;  %v1875_v59 = vadd.f32 %v1874_v8, %v1812_v63 }
 0x1ac   : > { %v3465_v40 = vadd.f32 %v1031_v37, %v371_v25  ;;  %v3467_v43 = vadd.f32 %v1159_v38, %v403_v27  ;;  %v1814_v25 = vmul.f32 %v3364_v21, %v3364_v21  ;;  %v1740_v28 = vadd.f32 %v1739_v20, %v3357_v13 }
 0x1ad   : > { %v1033_v31 = vpop.f32.mrf.mxu0  ;;  %v1161_v52 = vpop.f32.mrf.mxu1  ;;  %v1876_v37 = vadd.f32 %v1875_v59, %v1813_v9  ;;  %v407_v9 = vld [vmem:[#allocation2 + $0x178] sm:$0xff] }
 0x1ae   : > { %1300 = vst [vmem:[#allocation2 + $0x188] sm:$0xff] %v3465_v40  ;;  %v2389_v41 = vpack.c.bf16 %v3465_v40, %v3449_v12  ;;  %1332 = vst [vmem:[#allocation2 + $0x88] sm:$0xff] %v3467_v43  ;;  %v2469_v55 = vpack.c.bf16 %v3467_v43, %v3452_v15  ;;  %v1741_v31 = vadd.f32 %v1740_v28, %v3364_v21  ;;  %v376_v28 = vld [vmem:[#allocation2 + $0x1b8] sm:$0xff] }
 0x1af   : > { %v1036_v0 = vpop.f32.mrf.mxu0  ;;  %v1164_v1 = vpop.f32.mrf.mxu1  ;;  %v1877_v52 = vadd.f32 %v1876_v37, %v1814_v25 }
 0x1b0   : > { %2513 = vst [vmem:[%s3204_s23 + $0x40] sm:$0xff] %v2389_v41   ;;  %v3482_v49 = vadd.f32 %v1036_v0, %v372_v51  ;;  %2529 = vst [vmem:[%s3204_s23 + $0xc0] sm:$0xff] %v2469_v55   ;;  %v3485_v7 = vadd.f32 %v1164_v1, %v404_v53  ;;  %v1816_v53 = vmul.f32 %v3382_v45, %v3382_v45 }
 0x1b1   : > { %v1038_v10 = vpop.f32.mrf.mxu0  ;;  %v1166_v16 = vpop.f32.mrf.mxu1  ;;  %v1742_v55 = vadd.f32 %v1741_v31, %v3375_v35  ;;  %v1878_v63 = vadd.f32 %v1877_v52, %v1815_v3  ;;  %v1817_v0 = vmul.f32 %v3393_v57, %v3393_v57  ;;  %v408_v3 = vld [vmem:[#allocation2 + $0x68] sm:$0xff] }
 0x1b2   : > { %1301 = vst [vmem:[#allocation2 + $0x138] sm:$0xff] %v3482_v49  ;;  %1333 = vst [vmem:[#allocation2 + $0xa8] sm:$0xff] %v3485_v7 }
 0x1b3   : > { %v1039_v26 = vpop.f32.mrf.mxu0  ;;  %v1167_v27 = vpop.f32.mrf.mxu1  ;;  %v1743_v10 = vadd.f32 %v1742_v55, %v3382_v45  ;;  %v1879_v35 = vadd.f32 %v1878_v63, %v1816_v53  ;;  %v1819_v45 = vmul.f32 %v3411_v17, %v3411_v17  ;;  %v377_v55 = vld [vmem:[#allocation2 + $0x28] sm:$0xff] }
 0x1b4   : > { %v3495_v33 = vadd.f32 %v1039_v26, %v373_v11  ;;  %v3497_v34 = vadd.f32 %v1167_v27, %v405_v19  ;;  %v1818_v11 = vmul.f32 %v3400_v5, %v3400_v5 }
 0x1b5   : > { %v1041_v38 = vpop.f32.mrf.mxu0  ;;  %v1169_v44 = vpop.f32.mrf.mxu1  ;;  %v1744_v20 = vadd.f32 %v1743_v10, %v3393_v57  ;;  %v1880_v26 = vadd.f32 %v1879_v35, %v1817_v0  ;;  %v409_v0 = vld [vmem:[#allocation2 + $0x190] sm:$0xff] }
 0x1b6   : > { %1302 = vst [vmem:[#allocation2 + $0x140] sm:$0xff] %v3495_v33  ;;  %v2394_v13 = vpack.c.bf16 %v3495_v33, %v3482_v49  ;;  %1334 = vst [vmem:[#allocation2 + $0x1c8] sm:$0xff] %v3497_v34  ;;  %v2474_v51 = vpack.c.bf16 %v3497_v34, %v3485_v7 }
 0x1b7   : > { %v1044_v54 = vpop.f32.mrf.mxu0  ;;  %v1172_v41 = vpop.f32.mrf.mxu1  ;;  %v1745_v38 = vadd.f32 %v1744_v20, %v3400_v5  ;;  %v1881_v44 = vadd.f32 %v1880_v26, %v1818_v11  ;;  %v378_v20 = vld [vmem:[#allocation2 + $0x1e8] sm:$0xff] }
 0x1b8   : > { %2514 = vst [vmem:[%s3204_s23 + $0x48] sm:$0xff] %v2394_v13   ;;  %v3512_v21 = vadd.f32 %v1044_v54, %v374_v39  ;;  %2530 = vst [vmem:[%s3204_s23 + $0xc8] sm:$0xff] %v2474_v51   ;;  %v3515_v56 = vadd.f32 %v1172_v41, %v406_v23  ;;  %v1820_v23 = vmul.f32 %v3418_v29, %v3418_v29 }
 0x1b9   : > { %v1046_v1 = vpop.f32.mrf.mxu0  ;;  %v1174_v8 = vpop.f32.mrf.mxu1  ;;  %v1746_v51 = vadd.f32 %v1745_v38, %v3411_v17  ;;  %v1882_v53 = vadd.f32 %v1881_v44, %v1819_v45  ;;  %v1821_v54 = vmul.f32 %v3429_v47, %v3429_v47  ;;  %v410_v45 = vld [vmem:[#allocation2 + $0x198] sm:$0xff] }
 0x1ba   : > { %1303 = vst [vmem:[#allocation2 + $0x80] sm:$0xff] %v3512_v21  ;;  %1335 = vst [vmem:[#allocation2 + $0x170] sm:$0xff] %v3515_v56 }
 0x1bb   : > { %v1047_v16 = vpop.f32.mrf.mxu0  ;;  %v1175_v19 = vpop.f32.mrf.mxu1  ;;  %v1747_v1 = vadd.f32 %v1746_v51, %v3418_v29  ;;  %v1883_v17 = vadd.f32 %v1882_v53, %v1820_v23  ;;  %v1823_v29 = vmul.f32 %v3449_v12, %v3449_v12  ;;  %v379_v51 = vld [vmem:[#allocation2 + $0xf8] sm:$0xff] }
 0x1bc   : > { %v3525_v59 = vadd.f32 %v1047_v16, %v375_v2  ;;  %v3527_v25 = vadd.f32 %v1175_v19, %v407_v9  ;;  %v1822_v2 = vmul.f32 %v3436_v61, %v3436_v61 }
 0x1bd   : > { %v1049_v27 = vpop.f32.mrf.mxu0  ;;  %v1177_v37 = vpop.f32.mrf.mxu1  ;;  %v1748_v10 = vadd.f32 %v1747_v1, %v3429_v47  ;;  %v1884_v16 = vadd.f32 %v1883_v17, %v1821_v54  ;;  %v411_v54 = vld [vmem:[#allocation2 + $0x38] sm:$0xff] }
 0x1be   : > { %1304 = vst [vmem:[#allocation2 + $0x1a8] sm:$0xff] %v3525_v59  ;;  %v2399_v57 = vpack.c.bf16 %v3525_v59, %v3512_v21  ;;  %1336 = vst [vmem:[#allocation2 + $0x178] sm:$0xff] %v3527_v25  ;;  %v2479_v39 = vpack.c.bf16 %v3527_v25, %v3515_v56 }
 0x1bf   : > { %v1052_v31 = vpop.f32.mrf.mxu0  ;;  %v1180_v13 = vpop.f32.mrf.mxu1  ;;  %v1749_v27 = vadd.f32 %v1748_v10, %v3436_v61  ;;  %v1885_v37 = vadd.f32 %v1884_v16, %v1822_v2  ;;  %v380_v10 = vld [vmem:[#allocation2 + $0x160] sm:$0xff] }
 0x1c0   : > { %2515 = vst [vmem:[%s3204_s23 + $0x50] sm:$0xff] %v2399_v57   ;;  %v3542_v5 = vadd.f32 %v1052_v31, %v376_v28  ;;  %v3544_v52 = vadd.f32 %v1180_v13, %v408_v3  ;;  %2531 = vst [vmem:[%s3204_s23 + $0xd0] sm:$0xff] %v2479_v39   ;;  %v1824_v3 = vmul.f32 %v3465_v40, %v3465_v40 }
 0x1c1   : > { %v1054_v41 = vpop.f32.mrf.mxu0  ;;  %v1182_v63 = vpop.f32.mrf.mxu1  ;;  %v1750_v39 = vadd.f32 %v1749_v27, %v3449_v12  ;;  %v1886_v23 = vadd.f32 %v1885_v37, %v1823_v29  ;;  %v1825_v31 = vmul.f32 %v3482_v49, %v3482_v49  ;;  %v412_v29 = vld [vmem:[#allocation2 + $0xc0] sm:$0xff] }
 0x1c2   : > { %1305 = vst [vmem:[#allocation2 + $0x1b8] sm:$0xff] %v3542_v5  ;;  %1337 = vst [vmem:[#allocation2 + $0x68] sm:$0xff] %v3544_v52 }
 0x1c3   : > { %v1055_v8 = vpop.f32.mrf.mxu0  ;;  %v1183_v9 = vpop.f32.mrf.mxu1  ;;  %v1751_v41 = vadd.f32 %v1750_v39, %v3465_v40  ;;  %v1887_v12 = vadd.f32 %v1886_v23, %v1824_v3  ;;  %v1827_v40 = vmul.f32 %v3512_v21, %v3512_v21  ;;  %v381_v39 = vld [vmem:[#allocation2 + $0x30] sm:$0xff] }
 0x1c4   : > { %v3555_v35 = vadd.f32 %v1055_v8, %v377_v55  ;;  %v3557_v11 = vadd.f32 %v1183_v9, %v409_v0  ;;  %v1826_v55 = vmul.f32 %v3495_v33, %v3495_v33 }
 0x1c5   : > { %v1057_v19 = vpop.f32.mrf.mxu0  ;;  %v1185_v26 = vpop.f32.mrf.mxu1  ;;  %v1752_v1 = vadd.f32 %v1751_v41, %v3482_v49  ;;  %v1888_v8 = vadd.f32 %v1887_v12, %v1825_v31  ;;  %v413_v31 = vld [vmem:[#allocation2 + $0x1c0] sm:$0xff] }
 0x1c6   : > { %1306 = vst [vmem:[#allocation2 + $0x28] sm:$0xff] %v3555_v35  ;;  %v2404_v47 = vpack.c.bf16 %v3555_v35, %v3542_v5  ;;  %1338 = vst [vmem:[#allocation2 + $0x190] sm:$0xff] %v3557_v11  ;;  %v2484_v28 = vpack.c.bf16 %v3557_v11, %v3544_v52 }
 0x1c7   : > { %v1060_v38 = vpop.f32.mrf.mxu0  ;;  %v1188_v57 = vpop.f32.mrf.mxu1  ;;  %v1753_v19 = vadd.f32 %v1752_v1, %v3495_v33  ;;  %v1889_v26 = vadd.f32 %v1888_v8, %v1826_v55  ;;  %v382_v1 = vld [vmem:[#allocation2 + $0x1e0] sm:$0xff] }
 0x1c8   : > { %2516 = vst [vmem:[%s3204_s23 + $0x58] sm:$0xff] %v2404_v47   ;;  %v3572_v61 = vadd.f32 %v1060_v38, %v378_v20  ;;  %v3574_v44 = vadd.f32 %v1188_v57, %v410_v45  ;;  %2532 = vst [vmem:[%s3204_s23 + $0xd8] sm:$0xff] %v2484_v28   ;;  %v1828_v45 = vmul.f32 %v3525_v59, %v3525_v59 }
 0x1c9   : > { %v1062_v13 = vpop.f32.mrf.mxu0  ;;  %v1190_v53 = vpop.f32.mrf.mxu1  ;;  %v1754_v28 = vadd.f32 %v1753_v19, %v3512_v21  ;;  %v1890_v3 = vadd.f32 %v1889_v26, %v1827_v40  ;;  %v1829_v38 = vmul.f32 %v3542_v5, %v3542_v5  ;;  %v1830_v21 = vmul.f32 %v3555_v35, %v3555_v35  ;;  %v414_v40 = vld [vmem:[#allocation2 + $0x158] sm:$0xff] }
 0x1ca   : > { %1307 = vst [vmem:[#allocation2 + $0x1e8] sm:$0xff] %v3572_v61  ;;  %1339 = vst [vmem:[#allocation2 + $0x198] sm:$0xff] %v3574_v44 }
 0x1cb   : > { %v1063_v63 = vpop.f32.mrf.mxu0  ;;  %v1191_v0 = vpop.f32.mrf.mxu1  ;;  %v1755_v13 = vadd.f32 %v1754_v28, %v3525_v59  ;;  %v383_v28 = vld [vmem:[#allocation2] sm:$0xff] }
 0x1cc   : > { %v3585_v17 = vadd.f32 %v1063_v63, %v379_v51  ;;  %v3587_v2 = vadd.f32 %v1191_v0, %v411_v54  ;;  %v1891_v51 = vadd.f32 %v1890_v3, %v1828_v45  ;;  %v1831_v0 = vmul.f32 %v3572_v61, %v3572_v61 }
 0x1cd   : > { %v1065_v9 = vpop.f32.mrf.mxu0  ;;  %v1193_v16 = vpop.f32.mrf.mxu1  ;;  %v1756_v41 = vadd.f32 %v1755_v13, %v3542_v5 }
 0x1ce   : > { %1308 = vst [vmem:[#allocation2 + $0xf8] sm:$0xff] %v3585_v17  ;;  %v2409_v49 = vpack.c.bf16 %v3585_v17, %v3572_v61  ;;  %1340 = vst [vmem:[#allocation2 + $0x38] sm:$0xff] %v3587_v2  ;;  %v2489_v20 = vpack.c.bf16 %v3587_v2, %v3574_v44  ;;  %v1892_v63 = vadd.f32 %v1891_v51, %v1829_v38  ;;  %v415_v38 = vld [vmem:[#allocation2 + $0x10] sm:$0xff] }
 0x1cf   : > { %v1068_v27 = vpop.f32.mrf.mxu0  ;;  %v1196_v47 = vpop.f32.mrf.mxu1  ;;  %v1757_v9 = vadd.f32 %v1756_v41, %v3555_v35 }
 0x1d0   : > { %2517 = vst [vmem:[%s3204_s23 + $0x60] sm:$0xff] %v2409_v49   ;;  %v1245_v33 = vadd.f32 %v1068_v27, %v380_v10  ;;  %v3602_v37 = vadd.f32 %v1196_v47, %v412_v29  ;;  %2533 = vst [vmem:[%s3204_s23 + $0xe0] sm:$0xff] %v2489_v20   ;;  %v1893_v16 = vadd.f32 %v1892_v63, %v1830_v21  ;;  %v384_v63 = vld [vmem:[#allocation2 + $0xf0] sm:$0xff] }
 0x1d1   : > { %v1070_v57 = vpop.f32.mrf.mxu0  ;;  %v1198_v23 = vpop.f32.mrf.mxu1  ;;  %v1832_v29 = vmul.f32 %v3585_v17, %v3585_v17  ;;  %v1758_v20 = vadd.f32 %v1757_v9, %v3572_v61 }
 0x1d2   : > { %1309 = vst [vmem:[#allocation2 + $0x160] sm:$0xff] %v1245_v33  ;;  %1341 = vst [vmem:[#allocation2 + $0xc0] sm:$0xff] %v3602_v37  ;;  %v1894_v35 = vadd.f32 %v1893_v16, %v1831_v0  ;;  %v1833_v27 = vmul.f32 %v1245_v33, %v1245_v33 }
 0x1d3   : > { %v1071_v53 = vpop.f32.mrf.mxu0  ;;  %v1199_v54 = vpop.f32.mrf.mxu1  ;;  %v1759_v57 = vadd.f32 %v1758_v20, %v3585_v17 }
 0x1d4   : > { %v1246_v12 = vadd.f32 %v1071_v53, %v381_v39  ;;  %v3612_v55 = vadd.f32 %v1199_v54, %v413_v31  ;;  %v1895_v39 = vadd.f32 %v1894_v35, %v1832_v29  ;;  %v417_v35 = vld [vmem:[#allocation2 + $0xa0] sm:$0xff] }
 0x1d5   : > { %v1073_v59 = vpop.f32.mrf.mxu0  ;;  %v1201_v8 = vpop.f32.mrf.mxu1  ;;  %v1760_v13 = vadd.f32 %v1759_v57, %v1245_v33 }
 0x1d6   : > { %1310 = vst [vmem:[#allocation2 + $0x30] sm:$0xff] %v1246_v12  ;;  %v2414_v10 = vpack.c.bf16 %v1246_v12, %v1245_v33  ;;  %1342 = vst [vmem:[#allocation2 + $0x1c0] sm:$0xff] %v3612_v55  ;;  %v2494_v5 = vpack.c.bf16 %v3612_v55, %v3602_v37  ;;  %v1834_v23 = vmul.f32 %v1246_v12, %v1246_v12  ;;  %v416_v59 = vld [vmem:[#allocation2 + $0x58] sm:$0xff] }
 0x1d7   : > { %v1076_v19 = vpop.f32.mrf.mxu0  ;;  %v1204_v49 = vpop.f32.mrf.mxu1  ;;  %v1896_v53 = vadd.f32 %v1895_v39, %v1833_v27  ;;  %v1761_v17 = vadd.f32 %v1760_v13, %v1246_v12 }
 0x1d8   : > { %2518 = vst [vmem:[%s3204_s23 + $0x68] sm:$0xff] %v2414_v10   ;;  %v1247_v26 = vadd.f32 %v1076_v19, %v382_v1  ;;  %v3624_v45 = vadd.f32 %v1204_v49, %v414_v40  ;;  %2534 = vst [vmem:[%s3204_s23 + $0xe8] sm:$0xff] %v2494_v5   ;;  %v385_v49 = vld [vmem:[#allocation2 + $0x8] sm:$0xff] }
 0x1d9   : > { %v1078_v47 = vpop.f32.mrf.mxu0  ;;  %v1206_v3 = vpop.f32.mrf.mxu1  ;;  %v1897_v33 = vadd.f32 %v1896_v53, %v1834_v23 }
 0x1da   : > { %1311 = vst [vmem:[#allocation2 + $0x1e0] sm:$0xff] %v1247_v26  ;;  %1343 = vst [vmem:[#allocation2 + $0x158] sm:$0xff] %v3624_v45  ;;  %v1835_v54 = vmul.f32 %v1247_v26, %v1247_v26  ;;  %v1762_v5 = vadd.f32 %v1761_v17, %v1247_v26 }
 0x1db   : > { %v1079_v31 = vpop.f32.mrf.mxu0  ;;  %v1207_v61 = vpop.f32.mrf.mxu1 }
 0x1dc   : > { %v1248_v51 = vadd.f32 %v1079_v31, %v383_v28  ;;  %v3629_v21 = vadd.f32 %v1207_v61, %v415_v38  ;;  %v1898_v12 = vadd.f32 %v1897_v33, %v1835_v54 }
 0x1dd   : > { %v1081_v41 = vpop.f32.mrf.mxu0  ;;  %v1209_v0 = vpop.f32.mrf.mxu1 }
 0x1de   : > { %1312 = vst [vmem:[#allocation2] sm:$0xff] %v1248_v51  ;;  %v2419_v1 = vpack.c.bf16 %v1248_v51, %v1247_v26  ;;  %1344 = vst [vmem:[#allocation2 + $0x10] sm:$0xff] %v3629_v21  ;;  %v2499_v8 = vpack.c.bf16 %v3629_v21, %v3624_v45  ;;  %v1836_v40 = vmul.f32 %v1248_v51, %v1248_v51 }
 0x1df   : > { %v1084_v9 = vpop.f32.mrf.mxu0  ;;  %v1212_v10 = vpop.f32.mrf.mxu1  ;;  %v1763_v27 = vadd.f32 %v1762_v5, %v1248_v51  ;;  %v1839_v41 = vmul.f32 %v3306_v24, %v3306_v24 }
 0x1e0   : > { %2519 = vst [vmem:[%s3204_s23 + $0x70] sm:$0xff] %v2419_v1   ;;  %v1249_v16 = vadd.f32 %v1084_v9, %v384_v63  ;;  %v3635_v29 = vadd.f32 %v1212_v10, %v416_v59  ;;  %2535 = vst [vmem:[%s3204_s23 + $0xf0] sm:$0xff] %v2499_v8   ;;  %v1899_v28 = vadd.f32 %v1898_v12, %v1836_v40 }
 0x1e1   : > { %v1086_v19 = vpop.f32.mrf.mxu0  ;;  %v1214_v20 = vpop.f32.mrf.mxu1 }
 0x1e2   : > { %1313 = vst [vmem:[#allocation2 + $0xf0] sm:$0xff] %v1249_v16  ;;  %v1837_v47 = vmul.f32 %v1249_v16, %v1249_v16  ;;  %1345 = vst [vmem:[#allocation2 + $0x58] sm:$0xff] %v3635_v29  ;;  %v1764_v38 = vadd.f32 %v1763_v27, %v1249_v16 }
 0x1e3   : > { %v1087_v3 = vpop.f32.mrf.mxu0  ;;  %v1215_v26 = vpop.f32.mrf.mxu1 }
 0x1e4   : > { %v1250_v57 = vadd.f32 %v1087_v3, %v385_v49  ;;  %v3641_v39 = vadd.f32 %v1215_v26, %v417_v35  ;;  %v1900_v23 = vadd.f32 %v1899_v28, %v1837_v47 }
 0x1e5   : > { %v1089_v31 = vpop.f32.mrf.mxu0  ;;  %v1217_v61 = vpop.f32.mrf.mxu1 }
 0x1e6   : > { %1314 = vst [vmem:[#allocation2 + $0x8] sm:$0xff] %v1250_v57  ;;  %v2424_v13 = vpack.c.bf16 %v1250_v57, %v1249_v16  ;;  %v1765_v51 = vadd.f32 %v1764_v38, %v1250_v57  ;;  %v1838_v53 = vmul.f32 %v1250_v57, %v1250_v57  ;;  %1346 = vst [vmem:[#allocation2 + $0xa0] sm:$0xff] %v3641_v39 }
 0x1e7   : > { %v2504_v54 = vpack.c.bf16 %v3641_v39, %v3635_v29 }
 0x1e8   : > { %2520 = vst [vmem:[%s3204_s23 + $0x78] sm:$0xff] %v2424_v13   ;;  %v1766_v63 = vadd.f32 %v1765_v51, %v3306_v24  ;;  %v1901_v0 = vadd.f32 %v1900_v23, %v1838_v53 }
 0x1e9   : > { %2536 = vst [vmem:[%s3204_s23 + $0xf8] sm:$0xff] %v2504_v54  }
 0x1ea   : > { %2844 = shalt.err (!%p2841_p5)
}
 0x1eb   : > { %s2845_s12 = scalar_lea.hbm %s3646_s9, 4096  ;;  %s2849_s5 = scalar_lea.hbm %s3816_s2, 16384 }
 0x1ec   : > { %p2846_p7 = scmp.ne.s32.totalorder %s3646_s9, %s2845_s12  ;;  %p2850_p11 = scmp.lt.s32.totalorder %s3646_s9, %s3816_s2 }
 0x1ed   : > { %p2851_p10 = scmp.lt.s32.totalorder %s2849_s5, %s2845_s12 }
 0x1ee   : > { %p2847_p9 = pnand %p2846_p7, %p3835_p4 }
 0x1ef   : > { %p2852_p2 = por %p2851_p10, %p2850_p11 }
 0x1f0   : > { %p2848_p6 = pneg %p2847_p9 }
 0x1f2   : > { %p2853_p1 = pnand %p2852_p2, %p2848_p6 }
 0x1f4   : > { %2856 = shalt.err (!%p2853_p1)
}
 0x1f5   : > { %s2979_s23 = smov 64   ;;  %s2980_s25 = smov 4   ;;  %v1840_v24 = vmul.f32 %v3312_v32, %v3312_v32  ;;  %v1767_v59 = vadd.f32 %v1766_v63, %v3312_v32  ;;  %v1902_v17 = vadd.f32 %v1901_v0, %v1839_v41  ;;  %v1841_v1 = vmul.f32 %v3324_v42, %v3324_v42 }
 0x1f6   : > { %2575 = dma.vmem_to_hbm [thread:$0]  (%p3835_p4), %s3648_s27, 4096, %s3646_s9, %s1943_s18, %s2979_s23, %s2979_s23, %s2980_s25   ;;  %v1842_v40 = vmul.f32 %v3330_v50, %v3330_v50  ;;  %v1843_v5 = vmul.f32 %v3342_v60, %v3342_v60  ;;  %v1844_v32 = vmul.f32 %v3348_v4, %v3348_v4 }
 0x1f7   : > { %v1768_v8 = vadd.f32 %v1767_v59, %v3324_v42  ;;  %v1903_v33 = vadd.f32 %v1902_v17, %v1840_v24  ;;  %v1845_v42 = vmul.f32 %v3360_v14, %v3360_v14  ;;  %s2981_s13 = smov [#allocation9]   ;;  %s2982_s27 = smov [#allocation11]  }
 0x1f8   : > { %s1973_s21 = sshll.u32 %s2981_s13, 4  ;;  %s1986_s7 = sshll.u32 %s2982_s27, 4  ;;  %s1974_s21 = int_to_ptr.vmem [resolvable:$true] %s1973_s21  ;;  %s1987_s7 = int_to_ptr.vmem [resolvable:$true] %s1986_s7 }
 0x1f9   : > { %v1769_v9 = vadd.f32 %v1768_v8, %v3330_v50  ;;  %v1904_v10 = vadd.f32 %v1903_v33, %v1841_v1  ;;  %v1846_v50 = vmul.f32 %v3366_v22, %v3366_v22  ;;  %v1856_v1 = vmul.f32 %v3467_v43, %v3467_v43  ;;  %s2857_s8 = scalar_lea.vmem %s1974_s21, 16  ;;  %p3836_p8 = scmp.ne.s32.totalorder %s3825_s24, 0 }
 0x1fa   : > { %v1857_v33 = vmul.f32 %v3485_v7, %v3485_v7  ;;  %p2858_p4 = scmp.ne.s32.totalorder %s1974_s21, %s2857_s8  ;;  %s2863_s9 = scalar_lea.vmem %s1974_s21, 32 }
 0x1fb   : > { %v1770_v16 = vadd.f32 %v1769_v9, %v3342_v60  ;;  %v1905_v12 = vadd.f32 %v1904_v10, %v1842_v40  ;;  %v1847_v60 = vmul.f32 %v3378_v36, %v3378_v36  ;;  %p2864_p0 = scmp.lt.s32.totalorder %s1974_s21, %s1974_s21  ;;  %p2865_p3 = scmp.lt.s32.totalorder %s2863_s9, %s2857_s8 }
 0x1fc   : > { %p2859_p12 = pnand %p2858_p4, %p3836_p8 }
 0x1fd   : > { %v1771_v19 = vadd.f32 %v1770_v16, %v3348_v4  ;;  %v1906_v49 = vadd.f32 %v1905_v12, %v1843_v5  ;;  %v1848_v4 = vmul.f32 %v3384_v46, %v3384_v46  ;;  %v1859_v5 = vmul.f32 %v3515_v56, %v3515_v56  ;;  %p2866_p5 = por %p2865_p3, %p2864_p0 }
 0x1fe   : > { %v1860_v12 = vmul.f32 %v3527_v25, %v3527_v25  ;;  %p2860_p13 = pneg %p2859_p12 }
 0x1ff   : > { %v1772_v20 = vadd.f32 %v1771_v19, %v3360_v14  ;;  %v1907_v35 = vadd.f32 %v1906_v49, %v1844_v32  ;;  %v1849_v14 = vmul.f32 %v3396_v58, %v3396_v58  ;;  %v1861_v19 = vmul.f32 %v3544_v52, %v3544_v52 }
 0x200   : > { %p2867_p7 = pnand %p2866_p5, %p2860_p13 }
 0x201   : > { %v1773_v27 = vadd.f32 %v1772_v20, %v3366_v22  ;;  %v1908_v47 = vadd.f32 %v1907_v35, %v1845_v42  ;;  %v1850_v22 = vmul.f32 %v3402_v6, %v3402_v6  ;;  %v1862_v42 = vmul.f32 %v3557_v11, %v3557_v11 }
 0x202   : > { %v1863_v35 = vmul.f32 %v3574_v44, %v3574_v44 }
 0x203   : > { %v1909_v28 = vadd.f32 %v1908_v47, %v1846_v50  ;;  %v1774_v3 = vadd.f32 %v1773_v27, %v3378_v36  ;;  %v1851_v36 = vmul.f32 %v3414_v18, %v3414_v18  ;;  %v1864_v27 = vmul.f32 %v3587_v2, %v3587_v2 }
 0x205   : > { %v1775_v26 = vadd.f32 %v1774_v3, %v3384_v46  ;;  %v1910_v38 = vadd.f32 %v1909_v28, %v1847_v60  ;;  %v1852_v46 = vmul.f32 %v3420_v30, %v3420_v30  ;;  %v1865_v60 = vmul.f32 %v3602_v37, %v3602_v37 }
 0x206   : > { %v1866_v3 = vmul.f32 %v3612_v55, %v3612_v55 }
 0x207   : > { %v1776_v57 = vadd.f32 %v1775_v26, %v3396_v58  ;;  %v1911_v23 = vadd.f32 %v1910_v38, %v1848_v4  ;;  %v1853_v58 = vmul.f32 %v3432_v48, %v3432_v48  ;;  %v1867_v26 = vmul.f32 %v3624_v45, %v3624_v45 }
 0x209   : > { %v1777_v31 = vadd.f32 %v1776_v57, %v3402_v6  ;;  %v1912_v61 = vadd.f32 %v1911_v23, %v1849_v14  ;;  %v1854_v6 = vmul.f32 %v3438_v62, %v3438_v62  ;;  %v1868_v14 = vmul.f32 %v3629_v21, %v3629_v21 }
 0x20a   : > { %v1869_v23 = vmul.f32 %v3635_v29, %v3635_v29 }
 0x20b   : > { %v1778_v13 = vadd.f32 %v1777_v31, %v3414_v18  ;;  %v1913_v51 = vadd.f32 %v1912_v61, %v1850_v22  ;;  %v1855_v18 = vmul.f32 %v3452_v15, %v3452_v15  ;;  %v1870_v31 = vmul.f32 %v3641_v39, %v3641_v39 }
 0x20d   : > { %v1779_v53 = vadd.f32 %v1778_v13, %v3420_v30  ;;  %v1914_v54 = vadd.f32 %v1913_v51, %v1851_v36 }
 0x20f   : > { %v1780_v41 = vadd.f32 %v1779_v53, %v3432_v48  ;;  %v1915_v63 = vadd.f32 %v1914_v54, %v1852_v46 }
 0x211   : > { %v1781_v0 = vadd.f32 %v1780_v41, %v3438_v62  ;;  %v1916_v24 = vadd.f32 %v1915_v63, %v1853_v58  ;;  %v1858_v62 = vmul.f32 %v3497_v34, %v3497_v34  ;;  %v1734_v63 = vld [vmem:[#allocation9] sm:$0x1] }
 0x213   : > { %v1782_v59 = vadd.f32 %v1781_v0, %v3452_v15  ;;  %v1917_v17 = vadd.f32 %v1916_v24, %v1854_v6  ;;  %v1806_v0 = vld [vmem:[#allocation11] sm:$0x1] }
 0x215   : > { %v1783_v30 = vadd.f32 %v1782_v59, %v3467_v43  ;;  %v1918_v8 = vadd.f32 %v1917_v17, %v1855_v18 }
 0x217   : > { %v1919_v48 = vadd.f32 %v1918_v8, %v1856_v1  ;;  %v1784_v40 = vadd.f32 %v1783_v30, %v3485_v7 }
 0x219   : > { %v1785_v9 = vadd.f32 %v1784_v40, %v3497_v34  ;;  %v1920_v10 = vadd.f32 %v1919_v48, %v1857_v33 }
 0x21b   : > { %v1786_v15 = vadd.f32 %v1785_v9, %v3515_v56  ;;  %v1921_v16 = vadd.f32 %v1920_v10, %v1858_v62 }
 0x21d   : > { %v1787_v43 = vadd.f32 %v1786_v15, %v3527_v25  ;;  %v1922_v32 = vadd.f32 %v1921_v16, %v1859_v5 }
 0x21f   : > { %v1788_v7 = vadd.f32 %v1787_v43, %v3544_v52  ;;  %v1923_v49 = vadd.f32 %v1922_v32, %v1860_v12 }
 0x221   : > { %v1789_v34 = vadd.f32 %v1788_v7, %v3557_v11  ;;  %v1924_v20 = vadd.f32 %v1923_v49, %v1861_v19 }
 0x223   : > { %v1790_v56 = vadd.f32 %v1789_v34, %v3574_v44  ;;  %v1925_v50 = vadd.f32 %v1924_v20, %v1862_v42 }
 0x225   : > { %v1791_v25 = vadd.f32 %v1790_v56, %v3587_v2  ;;  %v1926_v47 = vadd.f32 %v1925_v50, %v1863_v35 }
 0x227   : > { %v1792_v52 = vadd.f32 %v1791_v25, %v3602_v37  ;;  %v1927_v28 = vadd.f32 %v1926_v47, %v1864_v27 }
 0x229   : > { %v1793_v11 = vadd.f32 %v1792_v52, %v3612_v55  ;;  %v1928_v4 = vadd.f32 %v1927_v28, %v1865_v60 }
 0x22b   : > { %v1794_v44 = vadd.f32 %v1793_v11, %v3624_v45  ;;  %v1929_v38 = vadd.f32 %v1928_v4, %v1866_v3 }
 0x22d   : > { %v1795_v2 = vadd.f32 %v1794_v44, %v3629_v21  ;;  %v1930_v57 = vadd.f32 %v1929_v38, %v1867_v26 }
 0x22f   : > { %v1796_v37 = vadd.f32 %v1795_v2, %v3635_v29  ;;  %v1931_v22 = vadd.f32 %v1930_v57, %v1868_v14 }
 0x231   : > { %v1797_v55 = vadd.f32 %v1796_v37, %v3641_v39  ;;  %v1932_v61 = vadd.f32 %v1931_v22, %v1869_v23 }
 0x233   : > { %v1798_v45 = vrot.slane %v1797_v55, 4  ;;  %v1933_v36 = vadd.f32 %v1932_v61, %v1870_v31 }
 0x235   : > { %v1799_v13 = vadd.f32 %v1798_v45, %v1797_v55  ;;  %v1934_v51 = vrot.slane %v1933_v36, 4 }
 0x237   : > { %v1800_v46 = vrot.slane %v1799_v13, 2  ;;  %v1935_v53 = vadd.f32 %v1934_v51, %v1933_v36 }
 0x239   : > { %v1801_v21 = vadd.f32 %v1800_v46, %v1799_v13  ;;  %v1936_v54 = vrot.slane %v1935_v53, 2 }
 0x23b   : > { %v1802_v58 = vrot.slane %v1801_v21, 1  ;;  %v1937_v41 = vadd.f32 %v1936_v54, %v1935_v53 }
 0x23d   : > { %v1803_v29 = vadd.f32 %v1802_v58, %v1801_v21  ;;  %v1938_v6 = vrot.slane %v1937_v41, 1 }
 0x23f   : > { %v1804_v39 = vadd.f32 %v1803_v29, %v1734_v63  ;;  %v1939_v24 = vadd.f32 %v1938_v6, %v1937_v41 }
 0x241   : > { %1805 = vst [vmem:[#allocation9] sm:$0x1] %v1804_v39  ;;  %v1940_v18 = vadd.f32 %v1939_v24, %v1806_v0 }
 0x242   : > { %2870 = shalt.err (!%p2867_p7)
}
 0x243   : > { %2577 = dma.vmem_to_hbm [thread:$0]  (%p3836_p8), %s1974_s21, 16, %s3817_s3, [#allocation10]   ;;  %1941 = vst [vmem:[#allocation11] sm:$0x1] %v1940_v18 }
 0x244   : > { %s2881_s14 = scalar_lea.vmem %s1987_s7, 16  ;;  %s2887_s11 = scalar_lea.vmem %s1987_s7, 32 }
 0x245   : > { %p2882_p9 = scmp.ne.s32.totalorder %s1987_s7, %s2881_s14  ;;  %p2888_p10 = scmp.lt.s32.totalorder %s1987_s7, %s1987_s7 }
 0x246   : > { %p2889_p2 = scmp.lt.s32.totalorder %s2887_s11, %s2881_s14 }
 0x247   : > { %p2883_p6 = pnand %p2882_p9, %p3836_p8 }
 0x248   : > { %p2890_p1 = por %p2889_p2, %p2888_p10 }
 0x249   : > { %p2884_p11 = pneg %p2883_p6 }
 0x24b   : > { %p2891_p4 = pnand %p2890_p1, %p2884_p11 }
 0x24d   : > { %2894 = shalt.err (!%p2891_p4)
}
 0x24e   : > { %2579 = dma.vmem_to_hbm [thread:$0]  (%p3836_p8), %s1987_s7, 16, %s3818_s4, [#allocation10]  }
 0x24f   : > { %2938 = dma.done.wait (%p3836_p8), [#allocation10], 32  }
 0x250   : > { %2940 = vsyncadd (%p3836_p8), [#allocation10], 4294967264 }
 0x251 PF: > { %p2604_p12 = scmp.ge.s32.totalorder %s2967_s20, 2  ;;  %s2006_s22 = sand.u32 1, %s2947_s15  }
 0x252   : > { %p3837_p13 = scmp.ne.s32.totalorder %s3827_s26, 0  ;;  %s2007_s30 = scalar_lea.sflag [#allocation5], %s2006_s22 }
 0x254   : > { %p2594_p0 = pnand %p2604_p12, %p3837_p13 }
 0x256   : > { %p2595_p3 = pneg %p2594_p0 }
 0x258   : > { %2942 = dma.done.wait (%p2595_p3), %s2007_s30, 4096  }
 0x259   : > { %2944 = vsyncadd (%p2595_p3), %s2007_s30, 4294963200  ;;  %s23_s20 = sadd.s32 1, %s2967_s20   ;;  %s3838_s24 = sld [smem:[#allocation16_spill]] }
 0x25a   : > { %p20_p5 = scmp.ge.s32.totalorder %s23_s20, 6   ;;  %s3839_s15 = smov %s2951_s16 }
 0x25b   : > { %s3840_s16 = smov %s2955_s17  ;;  %s3841_s17 = smov %s3103_s28 }
 0x25c   : > { %s3842_s18 = smov %s2963_s19  ;;  %22 = sbr.rel (!%p20_p5) target bundleno = 10 (0xa), region = 108 }
 0x25f   : > { %s3843_s19 = smov %s3838_s24 }
 0x261   :  { %2012 = vsyncpa [#allocation4], 1 }
 0x262   :  { %2014 = vsyncpa [#allocation4 + $0x1], 1 }
 0x263   :  { %2015 = vsyncpa [#allocation7], 1 }
 0x264   :  { %2016 = vsyncpa [#allocation5], 1 }
 0x265   :  { %2018 = vsyncpa [#allocation5 + $0x1], 1 }
 0x266   :  { %2019 = vsyncpa [#allocation10], 1 }

</bundles_post_ra>
